<compile_context>
chip_gen: v5e
topology: v5e:2x2
jax: 0.10.0
libtpu: 0.0.40
codegen_flags: <defaults>
</compile_context>

<pallas_src>
import numpy as np
import jax
import jax.numpy as jnp
from jax.experimental import pallas as pl
from jax.experimental.pallas import tpu as pltpu

INPUT_SIZE = 6
HIDDEN_SIZE = 32
I_PAD = 8          # input features zero-padded 6 -> 8 (aligned contraction dim)


# ----------------------------------------------------------------------------
# Pallas kernel: in-kernel input projection + GRU recurrence + masking +
# Linear + Sigmoid head.  Per-gate slab layout (everything lane-offset 0).
# ----------------------------------------------------------------------------
def _gru_value_kernel(x_ref, mask_ref,
                      wih_r_ref, wih_z_ref, wih_n_ref,
                      b_r_ref, b_z_ref, b_n_ref,
                      whh_r_ref, whh_z_ref, whh_n_ref,
                      bhhn_ref, wln_ref, bln_ref, out_ref):
    T, B, _ = x_ref.shape
    H = whh_r_ref.shape[0]
    f32 = jnp.float32

    wih_r = wih_r_ref[...]            # (I_PAD, H) f32
    wih_z = wih_z_ref[...]
    wih_n = wih_n_ref[...]
    whh_r = whh_r_ref[...]            # (H, H) bf16 (single-pass MXU)
    whh_z = whh_z_ref[...]
    whh_n = whh_n_ref[...]
    wln = wln_ref[...]                # (1, H)
    bln = bln_ref[...]                # (1, 1)

    # Hoist bias broadcasts out of the unrolled loop (no per-step broadcast).
    b_r = jnp.broadcast_to(b_r_ref[...], (B, H))       # b_ih_r + b_hh_r
    b_z = jnp.broadcast_to(b_z_ref[...], (B, H))       # b_ih_z + b_hh_z
    b_n = jnp.broadcast_to(b_n_ref[...], (B, H))       # b_ih_n only
    bhh_n = jnp.broadcast_to(bhhn_ref[...], (B, H))    # b_hh_n (stays inside r*())

    def gate_inputs(t):
        # Depends only on x -> off the serial h-chain; scheduler overlaps it.
        xt = x_ref[t]                                                 # (B, I_PAD)
        gr = jnp.dot(xt, wih_r, preferred_element_type=f32) + b_r
        gz = jnp.dot(xt, wih_z, preferred_element_type=f32) + b_z
        gn = jnp.dot(xt, wih_n, preferred_element_type=f32) + b_n
        return gr, gz, gn

    # --- t = 0: h == 0, so W_hh h == 0; skip the recurrent matmuls. --------
    gr0, gz0, gn0 = gate_inputs(0)
    r0 = jax.nn.sigmoid(gr0)
    z0 = jax.nn.sigmoid(gz0)
    n0 = jnp.tanh(gn0 + r0 * bhh_n)
    h = mask_ref[0] * ((1.0 - z0) * n0)                               # (B, H)

    # --- t = 1 .. T-1: fully unrolled (T small & static). ------------------
    for t in range(1, T):
        gr, gz, gn = gate_inputs(t)
        hb = h.astype(jnp.bfloat16)                      # bf16 MXU inputs,
        gh_r = jnp.dot(hb, whh_r, preferred_element_type=f32)   # f32 accumulate
        gh_z = jnp.dot(hb, whh_z, preferred_element_type=f32)
        gh_n = jnp.dot(hb, whh_n, preferred_element_type=f32)
        r = jax.nn.sigmoid(gr + gh_r)
        z = jax.nn.sigmoid(gz + gh_z)
        n = jnp.tanh(gn + r * (gh_n + bhh_n))
        h_new = n + z * (h - n)                          # == (1-z)*n + z*h
        h = h + mask_ref[t] * (h_new - h)                # freeze past seq length

    # pad_packed_sequence pads with zeros => padded_res[:, -1, :] is zero for
    # every sequence shorter than the max length.
    last = h * mask_ref[T - 1]                                        # (B, H)
    logits = jnp.sum(last * wln, axis=-1, keepdims=True) + bln        # (B, 1)
    out_ref[...] = jax.nn.sigmoid(logits)


# ----------------------------------------------------------------------------
# Parameters (deterministic, PyTorch-style uniform(-1/sqrt(H), 1/sqrt(H))).
# ----------------------------------------------------------------------------
def init_params(key, input_size=INPUT_SIZE, hidden=HIDDEN_SIZE):
    k = 1.0 / float(hidden) ** 0.5
    ks = jax.random.split(key, 6)
    w_ih = jax.random.uniform(ks[0], (3 * hidden, input_size), minval=-k, maxval=k)
    w_hh = jax.random.uniform(ks[1], (3 * hidden, hidden), minval=-k, maxval=k)
    b_ih = jax.random.uniform(ks[2], (3 * hidden,), minval=-k, maxval=k)
    b_hh = jax.random.uniform(ks[3], (3 * hidden,), minval=-k, maxval=k)
    w_ln = jax.random.uniform(ks[4], (1, hidden), minval=-k, maxval=k)
    b_ln = jax.random.uniform(ks[5], (1,), minval=-k, maxval=k)
    return {
        "wih_t": w_ih.T.astype(jnp.float32),                     # (I, 3H)
        "whh_t": w_hh.T.astype(jnp.float32),                     # (H, 3H)
        "bih":   b_ih.reshape(1, 3 * hidden).astype(jnp.float32),
        "bhh":   b_hh.reshape(1, 3 * hidden).astype(jnp.float32),
        "wln":   w_ln.astype(jnp.float32),                       # (1, H)
        "bln":   b_ln.reshape(1, 1).astype(jnp.float32),
    }


def prepare_kernel_params(params):
    """One-time conversion to the per-gate / padded / bf16 forms the kernel uses."""
    H = HIDDEN_SIZE
    wih_t, whh_t = params["wih_t"], params["whh_t"]
    bih, bhh = params["bih"], params["bhh"]

    def pad_i(w):  # (I, H) -> (I_PAD, H), zero rows (math-neutral)
        return jnp.pad(w, ((0, I_PAD - INPUT_SIZE), (0, 0)))

    return {
        "wih_r": pad_i(wih_t[:, 0:H]),
        "wih_z": pad_i(wih_t[:, H:2 * H]),
        "wih_n": pad_i(wih_t[:, 2 * H:3 * H]),
        "b_r":   bih[:, 0:H] + bhh[:, 0:H],
        "b_z":   bih[:, H:2 * H] + bhh[:, H:2 * H],
        "b_n":   bih[:, 2 * H:3 * H],
        "whh_r": whh_t[:, 0:H].astype(jnp.bfloat16),
        "whh_z": whh_t[:, H:2 * H].astype(jnp.bfloat16),
        "whh_n": whh_t[:, 2 * H:3 * H].astype(jnp.bfloat16),
        "bhh_n": bhh[:, 2 * H:3 * H],
        "wln":   params["wln"],
        "bln":   params["bln"],
    }


# ----------------------------------------------------------------------------
# Device side: a single jitted computation containing just the pallas_call.
# ----------------------------------------------------------------------------
@jax.jit
def _pallas_forward(x_tbi, mask, kp):
    B = x_tbi.shape[1]
    vmem = pltpu.MemorySpace.VMEM
    return pl.pallas_call(
        _gru_value_kernel,
        out_shape=jax.ShapeDtypeStruct((B, 1), jnp.float32),
        in_specs=[pl.BlockSpec(memory_space=vmem)] * 14,
        out_specs=pl.BlockSpec(memory_space=vmem),
    )(x_tbi, mask,
      kp["wih_r"], kp["wih_z"], kp["wih_n"],
      kp["b_r"], kp["b_z"], kp["b_n"],
      kp["whh_r"], kp["whh_z"], kp["whh_n"],
      kp["bhh_n"], kp["wln"], kp["bln"])


# ----------------------------------------------------------------------------
# Wrapper: padding / length-sort / transpose / mask on the HOST (numpy, no
# device dispatch); device work is exactly one XLA op (the Pallas kernel).
# ----------------------------------------------------------------------------
def value_network_forward(seqs, kparams):
    lengths = np.array([int(np.asarray(s).shape[0]) for s in seqs], dtype=np.int32)
    B = len(seqs)
    T = int(lengths.max())
    H = HIDDEN_SIZE

    x = np.zeros((B, T, I_PAD), np.float32)
    for i, s in enumerate(seqs):
        sa = np.asarray(s, dtype=np.float32)
        x[i, : sa.shape[0], :INPUT_SIZE] = sa

    # sort by descending length (as required by pack_padded_sequence)
    order = np.argsort(-lengths, kind="stable")
    x_sorted = x[order]
    lens_sorted = lengths[order]
    x_tbi = np.ascontiguousarray(np.transpose(x_sorted, (1, 0, 2)))     # (T,B,I_PAD)

    # Validity mask, pre-broadcast to (T, B, H) float {0,1}.
    mask = (np.arange(T)[:, None] < lens_sorted[None, :]).astype(np.float32)
    mask = np.repeat(mask[:, :, None], H, axis=2)                        # (T,B,H)

    return _pallas_forward(jnp.asarray(x_tbi), jnp.asarray(mask), kparams)


# ----------------------------------------------------------------------------
# Pure-JAX references (same math as the PyTorch module) for correctness checks.
# ----------------------------------------------------------------------------
def reference_forward(seqs, params, recurrent_dtype=jnp.float32):
    lengths = jnp.array([s.shape[0] for s in seqs], dtype=jnp.int32)
    B = len(seqs)
    T = int(max(int(s.shape[0]) for s in seqs))
    H = HIDDEN_SIZE

    x = jnp.zeros((B, T, INPUT_SIZE), jnp.float32)
    for i, s in enumerate(seqs):
        x = x.at[i, : s.shape[0], :].set(s.astype(jnp.float32))
    order = jnp.argsort(-lengths, stable=True)
    x = x[order]
    lens = lengths[order].reshape(B, 1)

    h = jnp.zeros((B, H), jnp.float32)
    for t in range(T):
        gi = x[:, t, :] @ params["wih_t"] + params["bih"]
        gh = jnp.dot(h.astype(recurrent_dtype),
                     params["whh_t"].astype(recurrent_dtype),
                     preferred_element_type=jnp.float32) + params["bhh"]
        r = jax.nn.sigmoid(gi[:, 0:H] + gh[:, 0:H])
        z = jax.nn.sigmoid(gi[:, H:2 * H] + gh[:, H:2 * H])
        n = jnp.tanh(gi[:, 2 * H:3 * H] + r * gh[:, 2 * H:3 * H])
        h_new = (1.0 - z) * n + z * h
        h = jnp.where(t < lens, h_new, h)
    last = jnp.where((T - 1) < lens, h, 0.0)
    return jax.nn.sigmoid(last @ params["wln"].T + params["bln"])


if __name__ == "__main__":
    key = jax.random.PRNGKey(0)
    kp_key, k1, k2, k3 = jax.random.split(key, 4)
    params = init_params(kp_key)
    kparams = prepare_kernel_params(params)

    # Batch of 3 variable-length sequences of 6-dim states (maxlen = 8).
    seqs = [
        jax.random.normal(k1, (5, INPUT_SIZE), jnp.float32),
        jax.random.normal(k2, (8, INPUT_SIZE), jnp.float32),
        jax.random.normal(k3, (3, INPUT_SIZE), jnp.float32),
    ]

    out = jax.block_until_ready(value_network_forward(seqs, kparams))
    assert out.shape == (3, 1)

    # Tight check vs. a reference with the same bf16 recurrent matmul inputs,
    # loose check vs. the pure-f32 PyTorch-equivalent math.
    ref_bf16 = reference_forward(seqs, params, recurrent_dtype=jnp.bfloat16)
    ref_f32 = reference_forward(seqs, params, recurrent_dtype=jnp.float32)
    assert jnp.allclose(out, ref_bf16, atol=1e-3, rtol=1e-3), (out, ref_bf16)
    assert jnp.allclose(out, ref_f32, atol=2e-2, rtol=2e-2), (out, ref_f32)

    print("KERNEL_OK")
</pallas_src>

<mosaic_0001>
module attributes {stable_mosaic.version = 11 : i64} {
  func.func @_gru_value_kernel(%arg0: memref<8x3x8xf32, #tpu.memory_space<vmem>>, %arg1: memref<8x3x32xf32, #tpu.memory_space<vmem>>, %arg2: memref<8x32xf32, #tpu.memory_space<vmem>>, %arg3: memref<8x32xf32, #tpu.memory_space<vmem>>, %arg4: memref<8x32xf32, #tpu.memory_space<vmem>>, %arg5: memref<1x32xf32, #tpu.memory_space<vmem>>, %arg6: memref<1x32xf32, #tpu.memory_space<vmem>>, %arg7: memref<1x32xf32, #tpu.memory_space<vmem>>, %arg8: memref<32x32xbf16, #tpu.memory_space<vmem>>, %arg9: memref<32x32xbf16, #tpu.memory_space<vmem>>, %arg10: memref<32x32xbf16, #tpu.memory_space<vmem>>, %arg11: memref<1x32xf32, #tpu.memory_space<vmem>>, %arg12: memref<1x32xf32, #tpu.memory_space<vmem>>, %arg13: memref<1x1xf32, #tpu.memory_space<vmem>>, %arg14: memref<3x1xf32, #tpu.memory_space<vmem>>) attributes {dimension_semantics = [], scalar_prefetch = 0 : i64, scratch_operands = 0 : i64, tpu.core_type = #tpu.core_type<tc>} {
    %c0 = arith.constant 0 : index
    %c0_0 = arith.constant 0 : index
    %0 = vector.load %arg2[%c0, %c0_0] : memref<8x32xf32, #tpu.memory_space<vmem>>, vector<8x32xf32>
    %c0_1 = arith.constant 0 : index
    %c0_2 = arith.constant 0 : index
    %1 = vector.load %arg3[%c0_1, %c0_2] : memref<8x32xf32, #tpu.memory_space<vmem>>, vector<8x32xf32>
    %c0_3 = arith.constant 0 : index
    %c0_4 = arith.constant 0 : index
    %2 = vector.load %arg4[%c0_3, %c0_4] : memref<8x32xf32, #tpu.memory_space<vmem>>, vector<8x32xf32>
    %c0_5 = arith.constant 0 : index
    %c0_6 = arith.constant 0 : index
    %3 = vector.load %arg8[%c0_5, %c0_6] : memref<32x32xbf16, #tpu.memory_space<vmem>>, vector<32x32xbf16>
    %c0_7 = arith.constant 0 : index
    %c0_8 = arith.constant 0 : index
    %4 = vector.load %arg9[%c0_7, %c0_8] : memref<32x32xbf16, #tpu.memory_space<vmem>>, vector<32x32xbf16>
    %c0_9 = arith.constant 0 : index
    %c0_10 = arith.constant 0 : index
    %5 = vector.load %arg10[%c0_9, %c0_10] : memref<32x32xbf16, #tpu.memory_space<vmem>>, vector<32x32xbf16>
    %c0_11 = arith.constant 0 : index
    %c0_12 = arith.constant 0 : index
    %6 = vector.load %arg12[%c0_11, %c0_12] : memref<1x32xf32, #tpu.memory_space<vmem>>, vector<1x32xf32>
    %c0_13 = arith.constant 0 : index
    %c0_14 = arith.constant 0 : index
    %7 = vector.load %arg13[%c0_13, %c0_14] : memref<1x1xf32, #tpu.memory_space<vmem>>, vector<1x1xf32>
    %c0_15 = arith.constant 0 : index
    %c0_16 = arith.constant 0 : index
    %8 = vector.load %arg5[%c0_15, %c0_16] : memref<1x32xf32, #tpu.memory_space<vmem>>, vector<1x32xf32>
    %9 = vector.shape_cast %8 : vector<1x32xf32> to vector<1x32xf32>
    %10 = vector.broadcast %9 : vector<1x32xf32> to vector<3x32xf32>
    %c0_17 = arith.constant 0 : index
    %c0_18 = arith.constant 0 : index
    %11 = vector.load %arg6[%c0_17, %c0_18] : memref<1x32xf32, #tpu.memory_space<vmem>>, vector<1x32xf32>
    %12 = vector.shape_cast %11 : vector<1x32xf32> to vector<1x32xf32>
    %13 = vector.broadcast %12 : vector<1x32xf32> to vector<3x32xf32>
    %c0_19 = arith.constant 0 : index
    %c0_20 = arith.constant 0 : index
    %14 = vector.load %arg7[%c0_19, %c0_20] : memref<1x32xf32, #tpu.memory_space<vmem>>, vector<1x32xf32>
    %15 = vector.shape_cast %14 : vector<1x32xf32> to vector<1x32xf32>
    %16 = vector.broadcast %15 : vector<1x32xf32> to vector<3x32xf32>
    %c0_21 = arith.constant 0 : index
    %c0_22 = arith.constant 0 : index
    %17 = vector.load %arg11[%c0_21, %c0_22] : memref<1x32xf32, #tpu.memory_space<vmem>>, vector<1x32xf32>
    %18 = vector.shape_cast %17 : vector<1x32xf32> to vector<1x32xf32>
    %19 = vector.broadcast %18 : vector<1x32xf32> to vector<3x32xf32>
    %c0_23 = arith.constant 0 : index
    %c0_24 = arith.constant 0 : index
    %c0_25 = arith.constant 0 : index
    %20 = vector.load %arg0[%c0_23, %c0_24, %c0_25] : memref<8x3x8xf32, #tpu.memory_space<vmem>>, vector<1x3x8xf32>
    %21 = vector.shape_cast %20 : vector<1x3x8xf32> to vector<3x8xf32>
    %cst = arith.constant dense<0.000000e+00> : vector<3x32xf32>
    %22 = tpu.matmul %21, %0, %cst {dimension_numbers = #tpu.dot_dimension_numbers<[1], [0], [0], [1], [0, 0, 1, 1], [], []>} : vector<3x8xf32>, vector<8x32xf32>, vector<3x32xf32> -> vector<3x32xf32>
    %23 = arith.addf %22, %10 : vector<3x32xf32>
    %cst_26 = arith.constant dense<0.000000e+00> : vector<3x32xf32>
    %24 = tpu.matmul %21, %1, %cst_26 {dimension_numbers = #tpu.dot_dimension_numbers<[1], [0], [0], [1], [0, 0, 1, 1], [], []>} : vector<3x8xf32>, vector<8x32xf32>, vector<3x32xf32> -> vector<3x32xf32>
    %25 = arith.addf %24, %13 : vector<3x32xf32>
    %cst_27 = arith.constant dense<0.000000e+00> : vector<3x32xf32>
    %26 = tpu.matmul %21, %2, %cst_27 {dimension_numbers = #tpu.dot_dimension_numbers<[1], [0], [0], [1], [0, 0, 1, 1], [], []>} : vector<3x8xf32>, vector<8x32xf32>, vector<3x32xf32> -> vector<3x32xf32>
    %27 = arith.addf %26, %16 : vector<3x32xf32>
    %28 = arith.negf %23 : vector<3x32xf32>
    %29 = math.exp %28 : vector<3x32xf32>
    %cst_28 = arith.constant 1.000000e+00 : f32
    %30 = vector.broadcast %cst_28 : f32 to vector<3x32xf32>
    %31 = arith.addf %30, %29 : vector<3x32xf32>
    %32 = arith.divf %30, %31 : vector<3x32xf32>
    %33 = arith.negf %25 : vector<3x32xf32>
    %34 = math.exp %33 : vector<3x32xf32>
    %cst_29 = arith.constant 1.000000e+00 : f32
    %35 = vector.broadcast %cst_29 : f32 to vector<3x32xf32>
    %36 = arith.addf %35, %34 : vector<3x32xf32>
    %37 = arith.divf %35, %36 : vector<3x32xf32>
    %38 = arith.mulf %32, %19 : vector<3x32xf32>
    %39 = arith.addf %27, %38 : vector<3x32xf32>
    %40 = math.tanh %39 : vector<3x32xf32>
    %c0_30 = arith.constant 0 : index
    %c0_31 = arith.constant 0 : index
    %c0_32 = arith.constant 0 : index
    %41 = vector.load %arg1[%c0_30, %c0_31, %c0_32] : memref<8x3x32xf32, #tpu.memory_space<vmem>>, vector<1x3x32xf32>
    %42 = vector.shape_cast %41 : vector<1x3x32xf32> to vector<3x32xf32>
    %cst_33 = arith.constant 1.000000e+00 : f32
    %43 = vector.broadcast %cst_33 : f32 to vector<3x32xf32>
    %44 = arith.subf %43, %37 : vector<3x32xf32>
    %45 = arith.mulf %44, %40 : vector<3x32xf32>
    %46 = arith.mulf %42, %45 : vector<3x32xf32>
    %c1 = arith.constant 1 : index
    %c0_34 = arith.constant 0 : index
    %c0_35 = arith.constant 0 : index
    %47 = vector.load %arg0[%c1, %c0_34, %c0_35] : memref<8x3x8xf32, #tpu.memory_space<vmem>>, vector<1x3x8xf32>
    %48 = vector.shape_cast %47 : vector<1x3x8xf32> to vector<3x8xf32>
    %cst_36 = arith.constant dense<0.000000e+00> : vector<3x32xf32>
    %49 = tpu.matmul %48, %0, %cst_36 {dimension_numbers = #tpu.dot_dimension_numbers<[1], [0], [0], [1], [0, 0, 1, 1], [], []>} : vector<3x8xf32>, vector<8x32xf32>, vector<3x32xf32> -> vector<3x32xf32>
    %50 = arith.addf %49, %10 : vector<3x32xf32>
    %cst_37 = arith.constant dense<0.000000e+00> : vector<3x32xf32>
    %51 = tpu.matmul %48, %1, %cst_37 {dimension_numbers = #tpu.dot_dimension_numbers<[1], [0], [0], [1], [0, 0, 1, 1], [], []>} : vector<3x8xf32>, vector<8x32xf32>, vector<3x32xf32> -> vector<3x32xf32>
    %52 = arith.addf %51, %13 : vector<3x32xf32>
    %cst_38 = arith.constant dense<0.000000e+00> : vector<3x32xf32>
    %53 = tpu.matmul %48, %2, %cst_38 {dimension_numbers = #tpu.dot_dimension_numbers<[1], [0], [0], [1], [0, 0, 1, 1], [], []>} : vector<3x8xf32>, vector<8x32xf32>, vector<3x32xf32> -> vector<3x32xf32>
    %54 = arith.addf %53, %16 : vector<3x32xf32>
    %55 = arith.truncf %46 : vector<3x32xf32> to vector<3x32xbf16>
    %cst_39 = arith.constant dense<0.000000e+00> : vector<3x32xf32>
    %56 = tpu.matmul %55, %3, %cst_39 {dimension_numbers = #tpu.dot_dimension_numbers<[1], [0], [0], [1], [0, 0, 1, 1], [], []>} : vector<3x32xbf16>, vector<32x32xbf16>, vector<3x32xf32> -> vector<3x32xf32>
    %cst_40 = arith.constant dense<0.000000e+00> : vector<3x32xf32>
    %57 = tpu.matmul %55, %4, %cst_40 {dimension_numbers = #tpu.dot_dimension_numbers<[1], [0], [0], [1], [0, 0, 1, 1], [], []>} : vector<3x32xbf16>, vector<32x32xbf16>, vector<3x32xf32> -> vector<3x32xf32>
    %cst_41 = arith.constant dense<0.000000e+00> : vector<3x32xf32>
    %58 = tpu.matmul %55, %5, %cst_41 {dimension_numbers = #tpu.dot_dimension_numbers<[1], [0], [0], [1], [0, 0, 1, 1], [], []>} : vector<3x32xbf16>, vector<32x32xbf16>, vector<3x32xf32> -> vector<3x32xf32>
    %59 = arith.addf %50, %56 : vector<3x32xf32>
    %60 = arith.negf %59 : vector<3x32xf32>
    %61 = math.exp %60 : vector<3x32xf32>
    %cst_42 = arith.constant 1.000000e+00 : f32
    %62 = vector.broadcast %cst_42 : f32 to vector<3x32xf32>
    %63 = arith.addf %62, %61 : vector<3x32xf32>
    %64 = arith.divf %62, %63 : vector<3x32xf32>
    %65 = arith.addf %52, %57 : vector<3x32xf32>
    %66 = arith.negf %65 : vector<3x32xf32>
    %67 = math.exp %66 : vector<3x32xf32>
    %cst_43 = arith.constant 1.000000e+00 : f32
    %68 = vector.broadcast %cst_43 : f32 to vector<3x32xf32>
    %69 = arith.addf %68, %67 : vector<3x32xf32>
    %70 = arith.divf %68, %69 : vector<3x32xf32>
    %71 = arith.addf %58, %19 : vector<3x32xf32>
    %72 = arith.mulf %64, %71 : vector<3x32xf32>
    %73 = arith.addf %54, %72 : vector<3x32xf32>
    %74 = math.tanh %73 : vector<3x32xf32>
    %75 = arith.subf %46, %74 : vector<3x32xf32>
    %76 = arith.mulf %70, %75 : vector<3x32xf32>
    %77 = arith.addf %74, %76 : vector<3x32xf32>
    %c1_44 = arith.constant 1 : index
    %c0_45 = arith.constant 0 : index
    %c0_46 = arith.constant 0 : index
    %78 = vector.load %arg1[%c1_44, %c0_45, %c0_46] : memref<8x3x32xf32, #tpu.memory_space<vmem>>, vector<1x3x32xf32>
    %79 = vector.shape_cast %78 : vector<1x3x32xf32> to vector<3x32xf32>
    %80 = arith.subf %77, %46 : vector<3x32xf32>
    %81 = arith.mulf %79, %80 : vector<3x32xf32>
    %82 = arith.addf %46, %81 : vector<3x32xf32>
    %c2 = arith.constant 2 : index
    %c0_47 = arith.constant 0 : index
    %c0_48 = arith.constant 0 : index
    %83 = vector.load %arg0[%c2, %c0_47, %c0_48] : memref<8x3x8xf32, #tpu.memory_space<vmem>>, vector<1x3x8xf32>
    %84 = vector.shape_cast %83 : vector<1x3x8xf32> to vector<3x8xf32>
    %cst_49 = arith.constant dense<0.000000e+00> : vector<3x32xf32>
    %85 = tpu.matmul %84, %0, %cst_49 {dimension_numbers = #tpu.dot_dimension_numbers<[1], [0], [0], [1], [0, 0, 1, 1], [], []>} : vector<3x8xf32>, vector<8x32xf32>, vector<3x32xf32> -> vector<3x32xf32>
    %86 = arith.addf %85, %10 : vector<3x32xf32>
    %cst_50 = arith.constant dense<0.000000e+00> : vector<3x32xf32>
    %87 = tpu.matmul %84, %1, %cst_50 {dimension_numbers = #tpu.dot_dimension_numbers<[1], [0], [0], [1], [0, 0, 1, 1], [], []>} : vector<3x8xf32>, vector<8x32xf32>, vector<3x32xf32> -> vector<3x32xf32>
    %88 = arith.addf %87, %13 : vector<3x32xf32>
    %cst_51 = arith.constant dense<0.000000e+00> : vector<3x32xf32>
    %89 = tpu.matmul %84, %2, %cst_51 {dimension_numbers = #tpu.dot_dimension_numbers<[1], [0], [0], [1], [0, 0, 1, 1], [], []>} : vector<3x8xf32>, vector<8x32xf32>, vector<3x32xf32> -> vector<3x32xf32>
    %90 = arith.addf %89, %16 : vector<3x32xf32>
    %91 = arith.truncf %82 : vector<3x32xf32> to vector<3x32xbf16>
    %cst_52 = arith.constant dense<0.000000e+00> : vector<3x32xf32>
    %92 = tpu.matmul %91, %3, %cst_52 {dimension_numbers = #tpu.dot_dimension_numbers<[1], [0], [0], [1], [0, 0, 1, 1], [], []>} : vector<3x32xbf16>, vector<32x32xbf16>, vector<3x32xf32> -> vector<3x32xf32>
    %cst_53 = arith.constant dense<0.000000e+00> : vector<3x32xf32>
    %93 = tpu.matmul %91, %4, %cst_53 {dimension_numbers = #tpu.dot_dimension_numbers<[1], [0], [0], [1], [0, 0, 1, 1], [], []>} : vector<3x32xbf16>, vector<32x32xbf16>, vector<3x32xf32> -> vector<3x32xf32>
    %cst_54 = arith.constant dense<0.000000e+00> : vector<3x32xf32>
    %94 = tpu.matmul %91, %5, %cst_54 {dimension_numbers = #tpu.dot_dimension_numbers<[1], [0], [0], [1], [0, 0, 1, 1], [], []>} : vector<3x32xbf16>, vector<32x32xbf16>, vector<3x32xf32> -> vector<3x32xf32>
    %95 = arith.addf %86, %92 : vector<3x32xf32>
    %96 = arith.negf %95 : vector<3x32xf32>
    %97 = math.exp %96 : vector<3x32xf32>
    %cst_55 = arith.constant 1.000000e+00 : f32
    %98 = vector.broadcast %cst_55 : f32 to vector<3x32xf32>
    %99 = arith.addf %98, %97 : vector<3x32xf32>
    %100 = arith.divf %98, %99 : vector<3x32xf32>
    %101 = arith.addf %88, %93 : vector<3x32xf32>
    %102 = arith.negf %101 : vector<3x32xf32>
    %103 = math.exp %102 : vector<3x32xf32>
    %cst_56 = arith.constant 1.000000e+00 : f32
    %104 = vector.broadcast %cst_56 : f32 to vector<3x32xf32>
    %105 = arith.addf %104, %103 : vector<3x32xf32>
    %106 = arith.divf %104, %105 : vector<3x32xf32>
    %107 = arith.addf %94, %19 : vector<3x32xf32>
    %108 = arith.mulf %100, %107 : vector<3x32xf32>
    %109 = arith.addf %90, %108 : vector<3x32xf32>
    %110 = math.tanh %109 : vector<3x32xf32>
    %111 = arith.subf %82, %110 : vector<3x32xf32>
    %112 = arith.mulf %106, %111 : vector<3x32xf32>
    %113 = arith.addf %110, %112 : vector<3x32xf32>
    %c2_57 = arith.constant 2 : index
    %c0_58 = arith.constant 0 : index
    %c0_59 = arith.constant 0 : index
    %114 = vector.load %arg1[%c2_57, %c0_58, %c0_59] : memref<8x3x32xf32, #tpu.memory_space<vmem>>, vector<1x3x32xf32>
    %115 = vector.shape_cast %114 : vector<1x3x32xf32> to vector<3x32xf32>
    %116 = arith.subf %113, %82 : vector<3x32xf32>
    %117 = arith.mulf %115, %116 : vector<3x32xf32>
    %118 = arith.addf %82, %117 : vector<3x32xf32>
    %c3 = arith.constant 3 : index
    %c0_60 = arith.constant 0 : index
    %c0_61 = arith.constant 0 : index
    %119 = vector.load %arg0[%c3, %c0_60, %c0_61] : memref<8x3x8xf32, #tpu.memory_space<vmem>>, vector<1x3x8xf32>
    %120 = vector.shape_cast %119 : vector<1x3x8xf32> to vector<3x8xf32>
    %cst_62 = arith.constant dense<0.000000e+00> : vector<3x32xf32>
    %121 = tpu.matmul %120, %0, %cst_62 {dimension_numbers = #tpu.dot_dimension_numbers<[1], [0], [0], [1], [0, 0, 1, 1], [], []>} : vector<3x8xf32>, vector<8x32xf32>, vector<3x32xf32> -> vector<3x32xf32>
    %122 = arith.addf %121, %10 : vector<3x32xf32>
    %cst_63 = arith.constant dense<0.000000e+00> : vector<3x32xf32>
    %123 = tpu.matmul %120, %1, %cst_63 {dimension_numbers = #tpu.dot_dimension_numbers<[1], [0], [0], [1], [0, 0, 1, 1], [], []>} : vector<3x8xf32>, vector<8x32xf32>, vector<3x32xf32> -> vector<3x32xf32>
    %124 = arith.addf %123, %13 : vector<3x32xf32>
    %cst_64 = arith.constant dense<0.000000e+00> : vector<3x32xf32>
    %125 = tpu.matmul %120, %2, %cst_64 {dimension_numbers = #tpu.dot_dimension_numbers<[1], [0], [0], [1], [0, 0, 1, 1], [], []>} : vector<3x8xf32>, vector<8x32xf32>, vector<3x32xf32> -> vector<3x32xf32>
    %126 = arith.addf %125, %16 : vector<3x32xf32>
    %127 = arith.truncf %118 : vector<3x32xf32> to vector<3x32xbf16>
    %cst_65 = arith.constant dense<0.000000e+00> : vector<3x32xf32>
    %128 = tpu.matmul %127, %3, %cst_65 {dimension_numbers = #tpu.dot_dimension_numbers<[1], [0], [0], [1], [0, 0, 1, 1], [], []>} : vector<3x32xbf16>, vector<32x32xbf16>, vector<3x32xf32> -> vector<3x32xf32>
    %cst_66 = arith.constant dense<0.000000e+00> : vector<3x32xf32>
    %129 = tpu.matmul %127, %4, %cst_66 {dimension_numbers = #tpu.dot_dimension_numbers<[1], [0], [0], [1], [0, 0, 1, 1], [], []>} : vector<3x32xbf16>, vector<32x32xbf16>, vector<3x32xf32> -> vector<3x32xf32>
    %cst_67 = arith.constant dense<0.000000e+00> : vector<3x32xf32>
    %130 = tpu.matmul %127, %5, %cst_67 {dimension_numbers = #tpu.dot_dimension_numbers<[1], [0], [0], [1], [0, 0, 1, 1], [], []>} : vector<3x32xbf16>, vector<32x32xbf16>, vector<3x32xf32> -> vector<3x32xf32>
    %131 = arith.addf %122, %128 : vector<3x32xf32>
    %132 = arith.negf %131 : vector<3x32xf32>
    %133 = math.exp %132 : vector<3x32xf32>
    %cst_68 = arith.constant 1.000000e+00 : f32
    %134 = vector.broadcast %cst_68 : f32 to vector<3x32xf32>
    %135 = arith.addf %134, %133 : vector<3x32xf32>
    %136 = arith.divf %134, %135 : vector<3x32xf32>
    %137 = arith.addf %124, %129 : vector<3x32xf32>
    %138 = arith.negf %137 : vector<3x32xf32>
    %139 = math.exp %138 : vector<3x32xf32>
    %cst_69 = arith.constant 1.000000e+00 : f32
    %140 = vector.broadcast %cst_69 : f32 to vector<3x32xf32>
    %141 = arith.addf %140, %139 : vector<3x32xf32>
    %142 = arith.divf %140, %141 : vector<3x32xf32>
    %143 = arith.addf %130, %19 : vector<3x32xf32>
    %144 = arith.mulf %136, %143 : vector<3x32xf32>
    %145 = arith.addf %126, %144 : vector<3x32xf32>
    %146 = math.tanh %145 : vector<3x32xf32>
    %147 = arith.subf %118, %146 : vector<3x32xf32>
    %148 = arith.mulf %142, %147 : vector<3x32xf32>
    %149 = arith.addf %146, %148 : vector<3x32xf32>
    %c3_70 = arith.constant 3 : index
    %c0_71 = arith.constant 0 : index
    %c0_72 = arith.constant 0 : index
    %150 = vector.load %arg1[%c3_70, %c0_71, %c0_72] : memref<8x3x32xf32, #tpu.memory_space<vmem>>, vector<1x3x32xf32>
    %151 = vector.shape_cast %150 : vector<1x3x32xf32> to vector<3x32xf32>
    %152 = arith.subf %149, %118 : vector<3x32xf32>
    %153 = arith.mulf %151, %152 : vector<3x32xf32>
    %154 = arith.addf %118, %153 : vector<3x32xf32>
    %c4 = arith.constant 4 : index
    %c0_73 = arith.constant 0 : index
    %c0_74 = arith.constant 0 : index
    %155 = vector.load %arg0[%c4, %c0_73, %c0_74] : memref<8x3x8xf32, #tpu.memory_space<vmem>>, vector<1x3x8xf32>
    %156 = vector.shape_cast %155 : vector<1x3x8xf32> to vector<3x8xf32>
    %cst_75 = arith.constant dense<0.000000e+00> : vector<3x32xf32>
    %157 = tpu.matmul %156, %0, %cst_75 {dimension_numbers = #tpu.dot_dimension_numbers<[1], [0], [0], [1], [0, 0, 1, 1], [], []>} : vector<3x8xf32>, vector<8x32xf32>, vector<3x32xf32> -> vector<3x32xf32>
    %158 = arith.addf %157, %10 : vector<3x32xf32>
    %cst_76 = arith.constant dense<0.000000e+00> : vector<3x32xf32>
    %159 = tpu.matmul %156, %1, %cst_76 {dimension_numbers = #tpu.dot_dimension_numbers<[1], [0], [0], [1], [0, 0, 1, 1], [], []>} : vector<3x8xf32>, vector<8x32xf32>, vector<3x32xf32> -> vector<3x32xf32>
    %160 = arith.addf %159, %13 : vector<3x32xf32>
    %cst_77 = arith.constant dense<0.000000e+00> : vector<3x32xf32>
    %161 = tpu.matmul %156, %2, %cst_77 {dimension_numbers = #tpu.dot_dimension_numbers<[1], [0], [0], [1], [0, 0, 1, 1], [], []>} : vector<3x8xf32>, vector<8x32xf32>, vector<3x32xf32> -> vector<3x32xf32>
    %162 = arith.addf %161, %16 : vector<3x32xf32>
    %163 = arith.truncf %154 : vector<3x32xf32> to vector<3x32xbf16>
    %cst_78 = arith.constant dense<0.000000e+00> : vector<3x32xf32>
    %164 = tpu.matmul %163, %3, %cst_78 {dimension_numbers = #tpu.dot_dimension_numbers<[1], [0], [0], [1], [0, 0, 1, 1], [], []>} : vector<3x32xbf16>, vector<32x32xbf16>, vector<3x32xf32> -> vector<3x32xf32>
    %cst_79 = arith.constant dense<0.000000e+00> : vector<3x32xf32>
    %165 = tpu.matmul %163, %4, %cst_79 {dimension_numbers = #tpu.dot_dimension_numbers<[1], [0], [0], [1], [0, 0, 1, 1], [], []>} : vector<3x32xbf16>, vector<32x32xbf16>, vector<3x32xf32> -> vector<3x32xf32>
    %cst_80 = arith.constant dense<0.000000e+00> : vector<3x32xf32>
    %166 = tpu.matmul %163, %5, %cst_80 {dimension_numbers = #tpu.dot_dimension_numbers<[1], [0], [0], [1], [0, 0, 1, 1], [], []>} : vector<3x32xbf16>, vector<32x32xbf16>, vector<3x32xf32> -> vector<3x32xf32>
    %167 = arith.addf %158, %164 : vector<3x32xf32>
    %168 = arith.negf %167 : vector<3x32xf32>
    %169 = math.exp %168 : vector<3x32xf32>
    %cst_81 = arith.constant 1.000000e+00 : f32
    %170 = vector.broadcast %cst_81 : f32 to vector<3x32xf32>
    %171 = arith.addf %170, %169 : vector<3x32xf32>
    %172 = arith.divf %170, %171 : vector<3x32xf32>
    %173 = arith.addf %160, %165 : vector<3x32xf32>
    %174 = arith.negf %173 : vector<3x32xf32>
    %175 = math.exp %174 : vector<3x32xf32>
    %cst_82 = arith.constant 1.000000e+00 : f32
    %176 = vector.broadcast %cst_82 : f32 to vector<3x32xf32>
    %177 = arith.addf %176, %175 : vector<3x32xf32>
    %178 = arith.divf %176, %177 : vector<3x32xf32>
    %179 = arith.addf %166, %19 : vector<3x32xf32>
    %180 = arith.mulf %172, %179 : vector<3x32xf32>
    %181 = arith.addf %162, %180 : vector<3x32xf32>
    %182 = math.tanh %181 : vector<3x32xf32>
    %183 = arith.subf %154, %182 : vector<3x32xf32>
    %184 = arith.mulf %178, %183 : vector<3x32xf32>
    %185 = arith.addf %182, %184 : vector<3x32xf32>
    %c4_83 = arith.constant 4 : index
    %c0_84 = arith.constant 0 : index
    %c0_85 = arith.constant 0 : index
    %186 = vector.load %arg1[%c4_83, %c0_84, %c0_85] : memref<8x3x32xf32, #tpu.memory_space<vmem>>, vector<1x3x32xf32>
    %187 = vector.shape_cast %186 : vector<1x3x32xf32> to vector<3x32xf32>
    %188 = arith.subf %185, %154 : vector<3x32xf32>
    %189 = arith.mulf %187, %188 : vector<3x32xf32>
    %190 = arith.addf %154, %189 : vector<3x32xf32>
    %c5 = arith.constant 5 : index
    %c0_86 = arith.constant 0 : index
    %c0_87 = arith.constant 0 : index
    %191 = vector.load %arg0[%c5, %c0_86, %c0_87] : memref<8x3x8xf32, #tpu.memory_space<vmem>>, vector<1x3x8xf32>
    %192 = vector.shape_cast %191 : vector<1x3x8xf32> to vector<3x8xf32>
    %cst_88 = arith.constant dense<0.000000e+00> : vector<3x32xf32>
    %193 = tpu.matmul %192, %0, %cst_88 {dimension_numbers = #tpu.dot_dimension_numbers<[1], [0], [0], [1], [0, 0, 1, 1], [], []>} : vector<3x8xf32>, vector<8x32xf32>, vector<3x32xf32> -> vector<3x32xf32>
    %194 = arith.addf %193, %10 : vector<3x32xf32>
    %cst_89 = arith.constant dense<0.000000e+00> : vector<3x32xf32>
    %195 = tpu.matmul %192, %1, %cst_89 {dimension_numbers = #tpu.dot_dimension_numbers<[1], [0], [0], [1], [0, 0, 1, 1], [], []>} : vector<3x8xf32>, vector<8x32xf32>, vector<3x32xf32> -> vector<3x32xf32>
    %196 = arith.addf %195, %13 : vector<3x32xf32>
    %cst_90 = arith.constant dense<0.000000e+00> : vector<3x32xf32>
    %197 = tpu.matmul %192, %2, %cst_90 {dimension_numbers = #tpu.dot_dimension_numbers<[1], [0], [0], [1], [0, 0, 1, 1], [], []>} : vector<3x8xf32>, vector<8x32xf32>, vector<3x32xf32> -> vector<3x32xf32>
    %198 = arith.addf %197, %16 : vector<3x32xf32>
    %199 = arith.truncf %190 : vector<3x32xf32> to vector<3x32xbf16>
    %cst_91 = arith.constant dense<0.000000e+00> : vector<3x32xf32>
    %200 = tpu.matmul %199, %3, %cst_91 {dimension_numbers = #tpu.dot_dimension_numbers<[1], [0], [0], [1], [0, 0, 1, 1], [], []>} : vector<3x32xbf16>, vector<32x32xbf16>, vector<3x32xf32> -> vector<3x32xf32>
    %cst_92 = arith.constant dense<0.000000e+00> : vector<3x32xf32>
    %201 = tpu.matmul %199, %4, %cst_92 {dimension_numbers = #tpu.dot_dimension_numbers<[1], [0], [0], [1], [0, 0, 1, 1], [], []>} : vector<3x32xbf16>, vector<32x32xbf16>, vector<3x32xf32> -> vector<3x32xf32>
    %cst_93 = arith.constant dense<0.000000e+00> : vector<3x32xf32>
    %202 = tpu.matmul %199, %5, %cst_93 {dimension_numbers = #tpu.dot_dimension_numbers<[1], [0], [0], [1], [0, 0, 1, 1], [], []>} : vector<3x32xbf16>, vector<32x32xbf16>, vector<3x32xf32> -> vector<3x32xf32>
    %203 = arith.addf %194, %200 : vector<3x32xf32>
    %204 = arith.negf %203 : vector<3x32xf32>
    %205 = math.exp %204 : vector<3x32xf32>
    %cst_94 = arith.constant 1.000000e+00 : f32
    %206 = vector.broadcast %cst_94 : f32 to vector<3x32xf32>
    %207 = arith.addf %206, %205 : vector<3x32xf32>
    %208 = arith.divf %206, %207 : vector<3x32xf32>
    %209 = arith.addf %196, %201 : vector<3x32xf32>
    %210 = arith.negf %209 : vector<3x32xf32>
    %211 = math.exp %210 : vector<3x32xf32>
    %cst_95 = arith.constant 1.000000e+00 : f32
    %212 = vector.broadcast %cst_95 : f32 to vector<3x32xf32>
    %213 = arith.addf %212, %211 : vector<3x32xf32>
    %214 = arith.divf %212, %213 : vector<3x32xf32>
    %215 = arith.addf %202, %19 : vector<3x32xf32>
    %216 = arith.mulf %208, %215 : vector<3x32xf32>
    %217 = arith.addf %198, %216 : vector<3x32xf32>
    %218 = math.tanh %217 : vector<3x32xf32>
    %219 = arith.subf %190, %218 : vector<3x32xf32>
    %220 = arith.mulf %214, %219 : vector<3x32xf32>
    %221 = arith.addf %218, %220 : vector<3x32xf32>
    %c5_96 = arith.constant 5 : index
    %c0_97 = arith.constant 0 : index
    %c0_98 = arith.constant 0 : index
    %222 = vector.load %arg1[%c5_96, %c0_97, %c0_98] : memref<8x3x32xf32, #tpu.memory_space<vmem>>, vector<1x3x32xf32>
    %223 = vector.shape_cast %222 : vector<1x3x32xf32> to vector<3x32xf32>
    %224 = arith.subf %221, %190 : vector<3x32xf32>
    %225 = arith.mulf %223, %224 : vector<3x32xf32>
    %226 = arith.addf %190, %225 : vector<3x32xf32>
    %c6 = arith.constant 6 : index
    %c0_99 = arith.constant 0 : index
    %c0_100 = arith.constant 0 : index
    %227 = vector.load %arg0[%c6, %c0_99, %c0_100] : memref<8x3x8xf32, #tpu.memory_space<vmem>>, vector<1x3x8xf32>
    %228 = vector.shape_cast %227 : vector<1x3x8xf32> to vector<3x8xf32>
    %cst_101 = arith.constant dense<0.000000e+00> : vector<3x32xf32>
    %229 = tpu.matmul %228, %0, %cst_101 {dimension_numbers = #tpu.dot_dimension_numbers<[1], [0], [0], [1], [0, 0, 1, 1], [], []>} : vector<3x8xf32>, vector<8x32xf32>, vector<3x32xf32> -> vector<3x32xf32>
    %230 = arith.addf %229, %10 : vector<3x32xf32>
    %cst_102 = arith.constant dense<0.000000e+00> : vector<3x32xf32>
    %231 = tpu.matmul %228, %1, %cst_102 {dimension_numbers = #tpu.dot_dimension_numbers<[1], [0], [0], [1], [0, 0, 1, 1], [], []>} : vector<3x8xf32>, vector<8x32xf32>, vector<3x32xf32> -> vector<3x32xf32>
    %232 = arith.addf %231, %13 : vector<3x32xf32>
    %cst_103 = arith.constant dense<0.000000e+00> : vector<3x32xf32>
    %233 = tpu.matmul %228, %2, %cst_103 {dimension_numbers = #tpu.dot_dimension_numbers<[1], [0], [0], [1], [0, 0, 1, 1], [], []>} : vector<3x8xf32>, vector<8x32xf32>, vector<3x32xf32> -> vector<3x32xf32>
    %234 = arith.addf %233, %16 : vector<3x32xf32>
    %235 = arith.truncf %226 : vector<3x32xf32> to vector<3x32xbf16>
    %cst_104 = arith.constant dense<0.000000e+00> : vector<3x32xf32>
    %236 = tpu.matmul %235, %3, %cst_104 {dimension_numbers = #tpu.dot_dimension_numbers<[1], [0], [0], [1], [0, 0, 1, 1], [], []>} : vector<3x32xbf16>, vector<32x32xbf16>, vector<3x32xf32> -> vector<3x32xf32>
    %cst_105 = arith.constant dense<0.000000e+00> : vector<3x32xf32>
    %237 = tpu.matmul %235, %4, %cst_105 {dimension_numbers = #tpu.dot_dimension_numbers<[1], [0], [0], [1], [0, 0, 1, 1], [], []>} : vector<3x32xbf16>, vector<32x32xbf16>, vector<3x32xf32> -> vector<3x32xf32>
    %cst_106 = arith.constant dense<0.000000e+00> : vector<3x32xf32>
    %238 = tpu.matmul %235, %5, %cst_106 {dimension_numbers = #tpu.dot_dimension_numbers<[1], [0], [0], [1], [0, 0, 1, 1], [], []>} : vector<3x32xbf16>, vector<32x32xbf16>, vector<3x32xf32> -> vector<3x32xf32>
    %239 = arith.addf %230, %236 : vector<3x32xf32>
    %240 = arith.negf %239 : vector<3x32xf32>
    %241 = math.exp %240 : vector<3x32xf32>
    %cst_107 = arith.constant 1.000000e+00 : f32
    %242 = vector.broadcast %cst_107 : f32 to vector<3x32xf32>
    %243 = arith.addf %242, %241 : vector<3x32xf32>
    %244 = arith.divf %242, %243 : vector<3x32xf32>
    %245 = arith.addf %232, %237 : vector<3x32xf32>
    %246 = arith.negf %245 : vector<3x32xf32>
    %247 = math.exp %246 : vector<3x32xf32>
    %cst_108 = arith.constant 1.000000e+00 : f32
    %248 = vector.broadcast %cst_108 : f32 to vector<3x32xf32>
    %249 = arith.addf %248, %247 : vector<3x32xf32>
    %250 = arith.divf %248, %249 : vector<3x32xf32>
    %251 = arith.addf %238, %19 : vector<3x32xf32>
    %252 = arith.mulf %244, %251 : vector<3x32xf32>
    %253 = arith.addf %234, %252 : vector<3x32xf32>
    %254 = math.tanh %253 : vector<3x32xf32>
    %255 = arith.subf %226, %254 : vector<3x32xf32>
    %256 = arith.mulf %250, %255 : vector<3x32xf32>
    %257 = arith.addf %254, %256 : vector<3x32xf32>
    %c6_109 = arith.constant 6 : index
    %c0_110 = arith.constant 0 : index
    %c0_111 = arith.constant 0 : index
    %258 = vector.load %arg1[%c6_109, %c0_110, %c0_111] : memref<8x3x32xf32, #tpu.memory_space<vmem>>, vector<1x3x32xf32>
    %259 = vector.shape_cast %258 : vector<1x3x32xf32> to vector<3x32xf32>
    %260 = arith.subf %257, %226 : vector<3x32xf32>
    %261 = arith.mulf %259, %260 : vector<3x32xf32>
    %262 = arith.addf %226, %261 : vector<3x32xf32>
    %c7 = arith.constant 7 : index
    %c0_112 = arith.constant 0 : index
    %c0_113 = arith.constant 0 : index
    %263 = vector.load %arg0[%c7, %c0_112, %c0_113] : memref<8x3x8xf32, #tpu.memory_space<vmem>>, vector<1x3x8xf32>
    %264 = vector.shape_cast %263 : vector<1x3x8xf32> to vector<3x8xf32>
    %cst_114 = arith.constant dense<0.000000e+00> : vector<3x32xf32>
    %265 = tpu.matmul %264, %0, %cst_114 {dimension_numbers = #tpu.dot_dimension_numbers<[1], [0], [0], [1], [0, 0, 1, 1], [], []>} : vector<3x8xf32>, vector<8x32xf32>, vector<3x32xf32> -> vector<3x32xf32>
    %266 = arith.addf %265, %10 : vector<3x32xf32>
    %cst_115 = arith.constant dense<0.000000e+00> : vector<3x32xf32>
    %267 = tpu.matmul %264, %1, %cst_115 {dimension_numbers = #tpu.dot_dimension_numbers<[1], [0], [0], [1], [0, 0, 1, 1], [], []>} : vector<3x8xf32>, vector<8x32xf32>, vector<3x32xf32> -> vector<3x32xf32>
    %268 = arith.addf %267, %13 : vector<3x32xf32>
    %cst_116 = arith.constant dense<0.000000e+00> : vector<3x32xf32>
    %269 = tpu.matmul %264, %2, %cst_116 {dimension_numbers = #tpu.dot_dimension_numbers<[1], [0], [0], [1], [0, 0, 1, 1], [], []>} : vector<3x8xf32>, vector<8x32xf32>, vector<3x32xf32> -> vector<3x32xf32>
    %270 = arith.addf %269, %16 : vector<3x32xf32>
    %271 = arith.truncf %262 : vector<3x32xf32> to vector<3x32xbf16>
    %cst_117 = arith.constant dense<0.000000e+00> : vector<3x32xf32>
    %272 = tpu.matmul %271, %3, %cst_117 {dimension_numbers = #tpu.dot_dimension_numbers<[1], [0], [0], [1], [0, 0, 1, 1], [], []>} : vector<3x32xbf16>, vector<32x32xbf16>, vector<3x32xf32> -> vector<3x32xf32>
    %cst_118 = arith.constant dense<0.000000e+00> : vector<3x32xf32>
    %273 = tpu.matmul %271, %4, %cst_118 {dimension_numbers = #tpu.dot_dimension_numbers<[1], [0], [0], [1], [0, 0, 1, 1], [], []>} : vector<3x32xbf16>, vector<32x32xbf16>, vector<3x32xf32> -> vector<3x32xf32>
    %cst_119 = arith.constant dense<0.000000e+00> : vector<3x32xf32>
    %274 = tpu.matmul %271, %5, %cst_119 {dimension_numbers = #tpu.dot_dimension_numbers<[1], [0], [0], [1], [0, 0, 1, 1], [], []>} : vector<3x32xbf16>, vector<32x32xbf16>, vector<3x32xf32> -> vector<3x32xf32>
    %275 = arith.addf %266, %272 : vector<3x32xf32>
    %276 = arith.negf %275 : vector<3x32xf32>
    %277 = math.exp %276 : vector<3x32xf32>
    %cst_120 = arith.constant 1.000000e+00 : f32
    %278 = vector.broadcast %cst_120 : f32 to vector<3x32xf32>
    %279 = arith.addf %278, %277 : vector<3x32xf32>
    %280 = arith.divf %278, %279 : vector<3x32xf32>
    %281 = arith.addf %268, %273 : vector<3x32xf32>
    %282 = arith.negf %281 : vector<3x32xf32>
    %283 = math.exp %282 : vector<3x32xf32>
    %cst_121 = arith.constant 1.000000e+00 : f32
    %284 = vector.broadcast %cst_121 : f32 to vector<3x32xf32>
    %285 = arith.addf %284, %283 : vector<3x32xf32>
    %286 = arith.divf %284, %285 : vector<3x32xf32>
    %287 = arith.addf %274, %19 : vector<3x32xf32>
    %288 = arith.mulf %280, %287 : vector<3x32xf32>
    %289 = arith.addf %270, %288 : vector<3x32xf32>
    %290 = math.tanh %289 : vector<3x32xf32>
    %291 = arith.subf %262, %290 : vector<3x32xf32>
    %292 = arith.mulf %286, %291 : vector<3x32xf32>
    %293 = arith.addf %290, %292 : vector<3x32xf32>
    %c7_122 = arith.constant 7 : index
    %c0_123 = arith.constant 0 : index
    %c0_124 = arith.constant 0 : index
    %294 = vector.load %arg1[%c7_122, %c0_123, %c0_124] : memref<8x3x32xf32, #tpu.memory_space<vmem>>, vector<1x3x32xf32>
    %295 = vector.shape_cast %294 : vector<1x3x32xf32> to vector<3x32xf32>
    %296 = arith.subf %293, %262 : vector<3x32xf32>
    %297 = arith.mulf %295, %296 : vector<3x32xf32>
    %298 = arith.addf %262, %297 : vector<3x32xf32>
    %c7_125 = arith.constant 7 : index
    %c0_126 = arith.constant 0 : index
    %c0_127 = arith.constant 0 : index
    %299 = vector.load %arg1[%c7_125, %c0_126, %c0_127] : memref<8x3x32xf32, #tpu.memory_space<vmem>>, vector<1x3x32xf32>
    %300 = vector.shape_cast %299 : vector<1x3x32xf32> to vector<3x32xf32>
    %301 = arith.mulf %298, %300 : vector<3x32xf32>
    %302 = vector.broadcast %6 : vector<1x32xf32> to vector<3x32xf32>
    %303 = arith.mulf %301, %302 : vector<3x32xf32>
    %cst_128 = arith.constant dense<0.000000e+00> : vector<3xf32>
    %304 = vector.multi_reduction <add>, %303, %cst_128 [1] : vector<3x32xf32> to vector<3xf32>
    %305 = vector.shape_cast %304 : vector<3xf32> to vector<3x1xf32>
    %306 = vector.broadcast %7 : vector<1x1xf32> to vector<3x1xf32>
    %307 = arith.addf %305, %306 : vector<3x1xf32>
    %308 = arith.negf %307 : vector<3x1xf32>
    %309 = math.exp %308 : vector<3x1xf32>
    %cst_129 = arith.constant 1.000000e+00 : f32
    %310 = vector.broadcast %cst_129 : f32 to vector<3x1xf32>
    %311 = arith.addf %310, %309 : vector<3x1xf32>
    %312 = arith.divf %310, %311 : vector<3x1xf32>
    %c0_130 = arith.constant 0 : index
    %c0_131 = arith.constant 0 : index
    %313 = vector.load %arg14[%c0_130, %c0_131] : memref<3x1xf32, #tpu.memory_space<vmem>>, vector<3x1xf32>
    tpu.vector_store %arg14[%c0_130, %c0_131], %312 {strides = array<i32>} : memref<3x1xf32, #tpu.memory_space<vmem>>, vector<3x1xf32>,
    return
  }
}

</mosaic_0001>

<bundles_post_ra>
// kernel: _pallas_forward.1
= control target key start
LH: loop header
LB: loop body
LE: loop exit
PB: predicated region body
PF: predicated region fallthrough
CT: control target
= control target key end

     0   :  { %vm84_vm0 = vcmask 64512   ;;  %vm271_vm9 = vcmask 261120   ;;  %s1978_s2 = inlined_call_operand.vmem [shape: f32[8,32], index: 2, kind: input, shape index: {}]   ;;  %s1979_s0 = inlined_call_operand.vmem [shape: f32[8,3,8], index: 0, kind: input, shape index: {}]   ;;  %s1980_s3 = inlined_call_operand.vmem [shape: f32[8,32], index: 3, kind: input, shape index: {}]   ;;  %s1981_s4 = inlined_call_operand.vmem [shape: f32[8,32], index: 4, kind: input, shape index: {}]   ;;  %s1982_s6 = inlined_call_operand.vmem [shape: f32[1,32], index: 6, kind: input, shape index: {}]   ;;  %s1983_s5 = inlined_call_operand.vmem [shape: f32[1,32], index: 5, kind: input, shape index: {}]   ;;  %s1984_s7 = inlined_call_operand.vmem [shape: f32[1,32], index: 7, kind: input, shape index: {}]   ;;  %s1985_s11 = inlined_call_operand.vmem [shape: f32[1,32], index: 11, kind: input, shape index: {}]   ;;  %s1986_s8 = inlined_call_operand.vmem [shape: bf16[32,32], index: 8, kind: input, shape index: {}]   ;;  %s1987_s9 = inlined_call_operand.vmem [shape: bf16[32,32], index: 9, kind: input, shape index: {}]   ;;  %s1988_s10 = inlined_call_operand.vmem [shape: bf16[32,32], index: 10, kind: input, shape index: {}]   ;;  %s1989_s1 = inlined_call_operand.vmem [shape: f32[8,3,32], index: 1, kind: input, shape index: {}]   ;;  %s1990_s12 = inlined_call_operand.vmem [shape: f32[1,32], index: 12, kind: input, shape index: {}]   ;;  %s1991_s13 = inlined_call_operand.<no memory space> [shape: f32[1,1], index: 13, kind: input, shape index: {}]   ;;  %s1992_s14 = inlined_call_operand.vmem [shape: f32[3,1], index: 14, kind: output, shape index: {}]  }
   0x1   :  { %v1659_v0 = vld [vmem:[%s1978_s2] sm:$0xff]  ;;  %v1702_v15 = vld [vmem:[%s1986_s8 + $0x8] sm:$0xff] }
   0x2   :  { %v83_v1 = vld [vmem:[%s1979_s0] sm:$0x7]  ;;  %103 = vmatpush.msra.mxu3 %v1659_v0  ;;  %v1386_v14 = vld [vmem:[%s1979_s0 + $0x4] sm:$0x7]  ;;  %v1707_v16 = vld [vmem:[%s1987_s9 + $0x8] sm:$0xff] }
   0x3   :  { %v1667_v2 = vld [vmem:[%s1980_s3] sm:$0xff]  ;;  %1381 = vmatmul.msk.f32.vlgmr.msra.gmra.mxu3 %vm84_vm0, %v83_v1  ;;  %v1714_v17 = vld [vmem:[%s1988_s10 + $0x8] sm:$0xff] }
   0x4   :  { %123 = vmatpush.msra.mxu1 %v1667_v2  ;;  %v1674_v3 = vld [vmem:[%s1981_s4] sm:$0xff]  ;;  %213 = vmatpush.msrb.mxu3 %v1659_v0 }
   0x5   :  { %1382 = vmatmul.msk.f32.vlgmr.msra.gmra.mxu1 %vm84_vm0, %v83_v1  ;;  %143 = vmatpush.msra.mxu2 %v1674_v3  ;;  %v1687_v4 = vld [vmem:[%s1982_s6] ss:$0 sm:$0xff] }
   0x6   :  { %1383 = vmatmul.msk.f32.vlgmr.msra.gmra.mxu2 %vm84_vm0, %v83_v1  ;;  %233 = vmatpush.msra.mxu0 %v1667_v2  ;;  %v1693_v8 = vld [vmem:[%s1983_s5] ss:$0 sm:$0xff] }
   0x7   :  { %253 = vmatpush.msrb.mxu1 %v1674_v3  ;;  %1388 = vmatmul.msk.f32.vlgmr.msra.gmra.mxu0 %vm84_vm0, %v1386_v14  ;;  %v1723_v19 = vld [vmem:[%s1986_s8] sm:$0xff] }
   0x8   :  { %281 = vmatpush.bf16.msrb.mxu2 %v1702_v15  ;;  %306 = vmatpush.bf16.msra.mxu3 %v1707_v16  ;;  %v1728_v20 = vld [vmem:[%s1987_s9] sm:$0xff] }
   0x9   :  { %409 = vmatpush.msra.mxu1 %v1659_v0  ;;  %371 = vmatpush.bf16.msrb.mxu0 %v1714_v17  ;;  %v1733_v21 = vld [vmem:[%s1988_s10] sm:$0xff] }
   0xa   :  { %v1747_v30 = vld [vmem:[%s1984_s7] ss:$0 sm:$0xff] }
   0xb   :  { %1387 = vmatmul.msk.f32.vlgmr.msrb.gmra.mxu3 %vm84_vm0, %v1386_v14  ;;  %v1752_v35 = vld [vmem:[%s1985_s11] ss:$0 sm:$0xff] }
   0xc   :  { %282 = vmatpush.bf16.msrb.mxu2 %v1723_v19  ;;  %307 = vmatpush.bf16.msra.mxu3 %v1728_v20  ;;  %v189_v51 = vld [vmem:[%s1989_s1] sm:$0x7] }
   0xd   :  { %1389 = vmatmul.msk.f32.vlgmr.msrb.gmra.mxu1 %vm84_vm0, %v1386_v14  ;;  %372 = vmatpush.bf16.msrb.mxu0 %v1733_v21 }
   0xe   :  { %429 = vmatpush.msrb.mxu1 %v1667_v2 }
  0x10   :  { %464 = vmatpush.bf16.msrb.mxu3 %v1702_v15  ;;  %449 = vmatpush.msra.mxu2 %v1674_v3 }
  0x11   :  { %477 = vmatpush.bf16.msra.mxu0 %v1707_v16 }
  0x14   :  { %465 = vmatpush.bf16.msrb.mxu3 %v1723_v19 }
  0x15   :  { %478 = vmatpush.bf16.msra.mxu0 %v1728_v20 }
  0x82   :  { %v125_v5 = vpop.f32.mrf.mxu1 }
  0x83   :  { %v126_v6 = vadd.f32 %v1687_v4, %v125_v5 }
  0x84   :  { %v235_v55 = vpop.f32.mrf.mxu0 }
  0x85   :  { %v1385_v7 = vmul.f32 -1.442695, %v126_v6  ;;  %v236_v58 = vadd.f32 %v1687_v4, %v235_v55 }
  0x86   :  { %v105_v9 = vpop.f32.mrf.mxu3 }
  0x87   :  { %1493 = vpow2.f32 %v1385_v7  ;;  %v106_v10 = vadd.f32 %v1693_v8, %v105_v9 }
  0x89   :  { %v1384_v11 = vmul.f32 -1.442695, %v106_v10  ;;  %v145_v34 = vpop.f32.mrf.mxu2  ;;  %v1420_v10 = vld [vmem:[%s1979_s0 + $0x8] sm:$0x7] }
  0x8a   :  { %v146_v39 = vadd.f32 %v1747_v30, %v145_v34  ;;  %1421 = vmatmul.msk.f32.vlgmr.msra.gmra.mxu1 %vm84_vm0, %v1420_v10 }
  0x8b   :  { %1495 = vpow2.f32 %v1384_v11  ;;  %530 = vmatpush.bf16.msra.mxu1 %v1714_v17 }
  0x8d   :  { %v1494_v12 = vpop.eup %1493 }
  0x8e   :  { %v170_v13 = vadd.f32 1.0, %v1494_v12  ;;  %v215_v56 = vpop.f32.mrf.mxu3 }
  0x8f   :  { %v216_v59 = vadd.f32 %v1693_v8, %v215_v56  ;;  %531 = vmatpush.bf16.msra.mxu1 %v1733_v21 }
  0x90   :  { %1497 = vrcp.f32 %v170_v13  ;;  %vm176_vm3 = vweird.f32 %v170_v13  ;;  %v182_v38 = vand.u32 2147483648, %v170_v13  ;;  %v180_v43 = vand.u32 2147483647, %v170_v13 }
  0x91   :  { %v1496_v18 = vpop.eup %1495 }
  0x92   :  { %v151_v22 = vadd.f32 1.0, %v1496_v18  ;;  %v183_v45 = vor.u32 1.1754944e-38, %v182_v38  ;;  %vm181_vm8 = vcmp.eq.f32.partialorder %v180_v43, 8.507059e+37  ;;  %1422 = vmatmul.msk.f32.vlgmr.msrb.gmra.mxu1 %vm84_vm0, %v1420_v10 }
  0x93   :  { %636 = vmatpush.bf16.msrb.mxu1 %v1707_v16 }
  0x94   :  { %1499 = vrcp.f32 %v151_v22  ;;  %v163_v29 = vand.u32 2147483648, %v151_v22  ;;  %v161_v32 = vand.u32 2147483647, %v151_v22  ;;  %vm157_vm2 = vweird.f32 %v151_v22 }
  0x96   :  { %v1498_v23 = vpop.eup %1497  ;;  %v164_v37 = vor.u32 1.1754944e-38, %v163_v29  ;;  %vm162_vm6 = vcmp.eq.f32.partialorder %v161_v32, 8.507059e+37  ;;  %v255_v29 = vpop.f32.mrf.mxu1 }
  0x97   :  { %v172_v24 = vmul.f32 %v1498_v23, %v170_v13  ;;  %vm177_vm5 = vweird.f32 %v1498_v23  ;;  %637 = vmatpush.bf16.msrb.mxu1 %v1728_v20 }
  0x98   :  { %vm178_vm7 = vmor %vm176_vm3, %vm177_vm5 }
  0x99   :  { %v173_v27 = vsub.f32 1.0, %v172_v24 }
  0x9a   :  { %v1500_v25 = vpop.eup %1499 }
  0x9b   :  { %v153_v26 = vmul.f32 %v1500_v25, %v151_v22  ;;  %vm158_vm1 = vweird.f32 %v1500_v25  ;;  %v174_v33 = vmul.f32 %v1498_v23, %v173_v27 }
  0x9c   :  { %vm159_vm4 = vmor %vm157_vm2, %vm158_vm1 }
  0x9d   :  { %v154_v28 = vsub.f32 1.0, %v153_v26  ;;  %v175_v42 = vadd.f32 %v1498_v23, %v174_v33 }
  0x9f   :  { %v155_v31 = vmul.f32 %v1500_v25, %v154_v28  ;;  %v179_v47 = vsel %vm178_vm7, %v1498_v23, %v175_v42 }
  0xa0   :  { %v184_v48 = vsel %vm181_vm8, %v183_v45, %v179_v47 }
  0xa1   :  { %v156_v36 = vadd.f32 %v1500_v25, %v155_v31  ;;  %v190_v49 = vsub.f32 1.0, %v184_v48 }
  0xa3   :  { %v160_v40 = vsel %vm159_vm4, %v1500_v25, %v156_v36  ;;  %v256_v36 = vadd.f32 %v1747_v30, %v255_v29 }
  0xa4   :  { %v165_v41 = vsel %vm162_vm6, %v164_v37, %v160_v40 }
  0xa5   :  { %v186_v44 = vmul.f32 %v1752_v35, %v165_v41 }
  0xa7   :  { %v187_v46 = vadd.f32 %v186_v44, %v146_v39 }
  0xa9   :  { %1501 = vtanh.f32 %v187_v46 }
  0xaf   :  { %v1502_v50 = vpop.eup %1501 }
  0xb0   :  { %v191_v52 = vmul.f32 %v1502_v50, %v190_v49 }
  0xb2   :  { %v1759_v53 = vmul.f32 %v191_v52, %v189_v51  ;;  %v1419_v52 = vld [vmem:[%s1989_s1 + $0x4] sm:$0x7] }
  0xb4   :  { %v258_v54 = vpack.c.bf16 %v1759_v53, %v1759_v53 }
  0xb6   :  { %1398 = vmatmul.msk.bf16.vlgmr.msrb.gmra.mxu2 %vm271_vm9, %v258_v54  ;;  %1407 = vmatmul.msk.bf16.vlgmr.msra.gmra.mxu3 %vm271_vm9, %v258_v54 }
  0xb7   :  { %1418 = vmatmul.msk.bf16.vlgmr.msrb.gmra.mxu0 %vm271_vm9, %v258_v54  ;;  %568 = vmatpush.msrb.mxu2 %v1659_v0 }
  0xb8   :  { %623 = vmatpush.bf16.msrb.mxu0 %v1702_v15  ;;  %608 = vmatpush.msra.mxu3 %v1674_v3 }
  0xbc   :  { %624 = vmatpush.bf16.msrb.mxu0 %v1723_v19 }
  0xc6   :  { %1423 = vmatmul.msk.f32.vlgmr.msra.gmra.mxu2 %vm84_vm0, %v1420_v10 }
  0xc7   :  { %588 = vmatpush.msra.mxu2 %v1667_v2 }
 0x134   :  { %v374_v57 = vpop.f32.mrf.mxu0 }
 0x135   :  { %v375_v34 = vadd.f32 %v1752_v35, %v374_v57 }
 0x139   :  { %v284_v60 = vpop.f32.mrf.mxu2  ;;  %v309_v61 = vpop.f32.mrf.mxu3 }
 0x13a   :  { %v313_v62 = vadd.f32 %v284_v60, %v216_v59  ;;  %v333_v63 = vadd.f32 %v309_v61, %v236_v58  ;;  %v411_v58 = vpop.f32.mrf.mxu1 }
 0x13c   :  { %v1408_v1 = vmul.f32 -1.442695, %v313_v62  ;;  %v1409_v5 = vmul.f32 -1.442695, %v333_v63  ;;  %v376_v6 = vpop.f32.mrf.mxu0  ;;  %v412_v63 = vadd.f32 %v1693_v8, %v411_v58 }
 0x13e   :  { %1503 = vpow2.f32 %v1408_v1 }
 0x13f   :  { %1505 = vpow2.f32 %v1409_v5 }
 0x141   :  { %v286_v7 = vpop.f32.mrf.mxu2  ;;  %v311_v9 = vpop.f32.mrf.mxu3 }
 0x144   :  { %v1504_v11 = vpop.eup %1503 }
 0x145   :  { %v1506_v12 = vpop.eup %1505  ;;  %v317_v13 = vadd.f32 1.0, %v1504_v11 }
 0x146   :  { %v337_v14 = vadd.f32 1.0, %v1506_v12 }
 0x147   :  { %1507 = vrcp.f32 %v317_v13  ;;  %v329_v26 = vand.u32 2147483648, %v317_v13  ;;  %v327_v28 = vand.u32 2147483647, %v317_v13  ;;  %vm323_vm11 = vweird.f32 %v317_v13 }
 0x148   :  { %1509 = vrcp.f32 %v337_v14  ;;  %v349_v43 = vand.u32 2147483648, %v337_v14  ;;  %vm343_vm15 = vweird.f32 %v337_v14  ;;  %v347_v44 = vand.u32 2147483647, %v337_v14 }
 0x149   :  { %v330_v33 = vor.u32 1.1754944e-38, %v329_v26  ;;  %vm328_vm13 = vcmp.eq.f32.partialorder %v327_v28, 8.507059e+37 }
 0x14a   :  { %v350_v47 = vor.u32 1.1754944e-38, %v349_v43  ;;  %vm348_vm2 = vcmp.eq.f32.partialorder %v347_v44, 8.507059e+37 }
 0x14d   :  { %v1508_v18 = vpop.eup %1507 }
 0x14e   :  { %v1510_v22 = vpop.eup %1509  ;;  %v319_v23 = vmul.f32 %v1508_v18, %v317_v13  ;;  %vm324_vm10 = vweird.f32 %v1508_v18  ;;  %v1430_v13 = vld [vmem:[%s1979_s0 + $0xc] sm:$0x7] }
 0x14f   :  { %v339_v25 = vmul.f32 %v1510_v22, %v337_v14  ;;  %vm325_vm12 = vmor %vm323_vm11, %vm324_vm10  ;;  %vm344_vm14 = vweird.f32 %v1510_v22  ;;  %1431 = vmatmul.msk.f32.vlgmr.msrb.gmra.mxu2 %vm84_vm0, %v1430_v13 }
 0x150   :  { %v320_v24 = vsub.f32 1.0, %v319_v23  ;;  %vm345_vm1 = vmor %vm343_vm15, %vm344_vm14  ;;  %689 = vmatpush.bf16.msrb.mxu2 %v1714_v17 }
 0x151   :  { %v340_v32 = vsub.f32 1.0, %v339_v25 }
 0x152   :  { %v321_v27 = vmul.f32 %v1508_v18, %v320_v24 }
 0x153   :  { %v341_v40 = vmul.f32 %v1510_v22, %v340_v32  ;;  %v451_v32 = vpop.f32.mrf.mxu2 }
 0x154   :  { %v322_v31 = vadd.f32 %v1508_v18, %v321_v27  ;;  %690 = vmatpush.bf16.msrb.mxu2 %v1733_v21 }
 0x155   :  { %v342_v42 = vadd.f32 %v1510_v22, %v341_v40 }
 0x156   :  { %v326_v37 = vsel %vm325_vm12, %v1508_v18, %v322_v31 }
 0x157   :  { %v331_v38 = vsel %vm328_vm13, %v330_v33, %v326_v37  ;;  %v346_v45 = vsel %vm345_vm1, %v1510_v22, %v342_v42  ;;  %1432 = vmatmul.msk.f32.vlgmr.msra.gmra.mxu2 %vm84_vm0, %v1430_v13 }
 0x158   :  { %v378_v39 = vmul.f32 %v375_v34, %v331_v38  ;;  %v351_v49 = vsel %vm348_vm2, %v350_v47, %v346_v45  ;;  %795 = vmatpush.bf16.msra.mxu2 %v1707_v16  ;;  %v452_v38 = vadd.f32 %v1747_v30, %v451_v32 }
 0x15a   :  { %v379_v41 = vadd.f32 %v378_v39, %v256_v36 }
 0x15c   :  { %1511 = vtanh.f32 %v379_v41  ;;  %796 = vmatpush.bf16.msra.mxu2 %v1728_v20 }
 0x162   :  { %v1512_v46 = vpop.eup %1511 }
 0x163   :  { %v381_v48 = vsub.f32 %v1759_v53, %v1512_v46 }
 0x165   :  { %v382_v50 = vmul.f32 %v381_v48, %v351_v49 }
 0x167   :  { %v383_v51 = vadd.f32 %v1512_v46, %v382_v50 }
 0x169   :  { %v386_v54 = vsub.f32 %v383_v51, %v1759_v53 }
 0x16b   :  { %v387_v55 = vmul.f32 %v1419_v52, %v386_v54 }
 0x16d   :  { %v1791_v56 = vadd.f32 %v387_v55, %v1759_v53  ;;  %v431_v53 = vpop.f32.mrf.mxu1  ;;  %v1429_v55 = vld [vmem:[%s1989_s1 + $0x8] sm:$0x7] }
 0x16e   :  { %v432_v59 = vadd.f32 %v1687_v4, %v431_v53 }
 0x16f   :  { %v454_v57 = vpack.c.bf16 %v1791_v56, %v1791_v56 }
 0x171   :  { %1424 = vmatmul.msk.bf16.vlgmr.msrb.gmra.mxu3 %vm271_vm9, %v454_v57  ;;  %1425 = vmatmul.msk.bf16.vlgmr.msra.gmra.mxu0 %vm271_vm9, %v454_v57 }
 0x172   :  { %1428 = vmatmul.msk.bf16.vlgmr.msra.gmra.mxu1 %vm271_vm9, %v454_v57  ;;  %727 = vmatpush.msrb.mxu3 %v1659_v0 }
 0x173   :  { %782 = vmatpush.bf16.msra.mxu1 %v1702_v15  ;;  %767 = vmatpush.msra.mxu0 %v1674_v3 }
 0x177   :  { %783 = vmatpush.bf16.msra.mxu1 %v1723_v19 }
 0x181   :  { %1433 = vmatmul.msk.f32.vlgmr.msra.gmra.mxu3 %vm84_vm0, %v1430_v13  ;;  %v1440_v13 = vld [vmem:[%s1979_s0 + $0x10] sm:$0x7] }
 0x182   :  { %747 = vmatpush.msra.mxu3 %v1667_v2 }
 0x189   :  { %1441 = vmatmul.msk.f32.vlgmr.msrb.gmra.mxu3 %vm84_vm0, %v1440_v13 }
 0x18a   :  { %848 = vmatpush.bf16.msrb.mxu3 %v1714_v17 }
 0x18e   :  { %849 = vmatpush.bf16.msrb.mxu3 %v1733_v21 }
 0x191   :  { %1442 = vmatmul.msk.f32.vlgmr.msra.gmra.mxu3 %vm84_vm0, %v1440_v13 }
 0x192   :  { %954 = vmatpush.bf16.msra.mxu3 %v1707_v16 }
 0x196   :  { %955 = vmatpush.bf16.msra.mxu3 %v1728_v20 }
 0x1ee   :  { %v480_v60 = vpop.f32.mrf.mxu0 }
 0x1ef   :  { %v504_v61 = vadd.f32 %v480_v60, %v432_v59  ;;  %v533_v62 = vpop.f32.mrf.mxu1  ;;  %v570_v60 = vpop.f32.mrf.mxu2 }
 0x1f0   :  { %v534_v37 = vadd.f32 %v1752_v35, %v533_v62 }
 0x1f1   :  { %v1427_v1 = vmul.f32 -1.442695, %v504_v61  ;;  %v571_v61 = vadd.f32 %v1693_v8, %v570_v60 }
 0x1f3   :  { %1513 = vpow2.f32 %v1427_v1 }
 0x1f4   :  { %v467_v5 = vpop.f32.mrf.mxu3 }
 0x1f5   :  { %v484_v6 = vadd.f32 %v467_v5, %v412_v63 }
 0x1f6   :  { %v482_v7 = vpop.f32.mrf.mxu0 }
 0x1f7   :  { %v1426_v9 = vmul.f32 -1.442695, %v484_v6  ;;  %v535_v10 = vpop.f32.mrf.mxu1 }
 0x1f9   :  { %1515 = vpow2.f32 %v1426_v9  ;;  %v1514_v11 = vpop.eup %1513 }
 0x1fa   :  { %v508_v18 = vadd.f32 1.0, %v1514_v11 }
 0x1fc   :  { %v469_v12 = vpop.f32.mrf.mxu3  ;;  %v520_v45 = vand.u32 2147483648, %v508_v18  ;;  %vm514_vm8 = vweird.f32 %v508_v18  ;;  %v518_v46 = vand.u32 2147483647, %v508_v18 }
 0x1fe   :  { %v521_v49 = vor.u32 1.1754944e-38, %v520_v45  ;;  %vm519_vm11 = vcmp.eq.f32.partialorder %v518_v46, 8.507059e+37 }
 0x1ff   :  { %v1516_v14 = vpop.eup %1515 }
 0x200   :  { %v488_v22 = vadd.f32 1.0, %v1516_v14 }
 0x202   :  { %1517 = vrcp.f32 %v488_v22  ;;  %v500_v28 = vand.u32 2147483648, %v488_v22  ;;  %v498_v31 = vand.u32 2147483647, %v488_v22  ;;  %vm494_vm4 = vweird.f32 %v488_v22 }
 0x203   :  { %1519 = vrcp.f32 %v508_v18 }
 0x204   :  { %v501_v36 = vor.u32 1.1754944e-38, %v500_v28  ;;  %vm499_vm6 = vcmp.eq.f32.partialorder %v498_v31, 8.507059e+37 }
 0x208   :  { %v1518_v23 = vpop.eup %1517 }
 0x209   :  { %v1520_v24 = vpop.eup %1519  ;;  %v490_v25 = vmul.f32 %v1518_v23, %v488_v22  ;;  %vm495_vm3 = vweird.f32 %v1518_v23 }
 0x20a   :  { %v510_v27 = vmul.f32 %v1520_v24, %v508_v18  ;;  %vm496_vm5 = vmor %vm494_vm4, %vm495_vm3  ;;  %vm515_vm7 = vweird.f32 %v1520_v24 }
 0x20b   :  { %v491_v26 = vsub.f32 1.0, %v490_v25  ;;  %vm516_vm10 = vmor %vm514_vm8, %vm515_vm7 }
 0x20c   :  { %v511_v34 = vsub.f32 1.0, %v510_v27 }
 0x20d   :  { %v492_v29 = vmul.f32 %v1518_v23, %v491_v26 }
 0x20e   :  { %v512_v42 = vmul.f32 %v1520_v24, %v511_v34  ;;  %v610_v34 = vpop.f32.mrf.mxu3 }
 0x20f   :  { %v493_v33 = vadd.f32 %v1518_v23, %v492_v29 }
 0x210   :  { %v513_v44 = vadd.f32 %v1520_v24, %v512_v42 }
 0x211   :  { %v497_v39 = vsel %vm496_vm5, %v1518_v23, %v493_v33 }
 0x212   :  { %v502_v40 = vsel %vm499_vm6, %v501_v36, %v497_v39  ;;  %v517_v47 = vsel %vm516_vm10, %v1520_v24, %v513_v44 }
 0x213   :  { %v537_v41 = vmul.f32 %v534_v37, %v502_v40  ;;  %v522_v51 = vsel %vm519_vm11, %v521_v49, %v517_v47 }
 0x215   :  { %v538_v43 = vadd.f32 %v537_v41, %v452_v38  ;;  %v611_v41 = vadd.f32 %v1747_v30, %v610_v34 }
 0x217   :  { %1521 = vtanh.f32 %v538_v43 }
 0x21d   :  { %v1522_v48 = vpop.eup %1521 }
 0x21e   :  { %v540_v50 = vsub.f32 %v1791_v56, %v1522_v48 }
 0x220   :  { %v541_v52 = vmul.f32 %v540_v50, %v522_v51 }
 0x222   :  { %v542_v54 = vadd.f32 %v1522_v48, %v541_v52 }
 0x224   :  { %v545_v57 = vsub.f32 %v542_v54, %v1791_v56 }
 0x226   :  { %v546_v58 = vmul.f32 %v1429_v55, %v545_v57 }
 0x228   :  { %v1823_v53 = vadd.f32 %v546_v58, %v1791_v56  ;;  %v590_v56 = vpop.f32.mrf.mxu2  ;;  %v1439_v58 = vld [vmem:[%s1989_s1 + $0xc] sm:$0x7] }
 0x229   :  { %v591_v62 = vadd.f32 %v1687_v4, %v590_v56 }
 0x22a   :  { %v613_v59 = vpack.c.bf16 %v1823_v53, %v1823_v53 }
 0x22c   :  { %1434 = vmatmul.msk.bf16.vlgmr.msrb.gmra.mxu0 %vm271_vm9, %v613_v59  ;;  %1435 = vmatmul.msk.bf16.vlgmr.msrb.gmra.mxu1 %vm271_vm9, %v613_v59 }
 0x22d   :  { %1438 = vmatmul.msk.bf16.vlgmr.msrb.gmra.mxu2 %vm271_vm9, %v613_v59  ;;  %886 = vmatpush.msrb.mxu0 %v1659_v0 }
 0x22e   :  { %941 = vmatpush.bf16.msrb.mxu2 %v1702_v15  ;;  %926 = vmatpush.msrb.mxu1 %v1674_v3 }
 0x232   :  { %942 = vmatpush.bf16.msrb.mxu2 %v1723_v19 }
 0x23c   :  { %1443 = vmatmul.msk.f32.vlgmr.msra.gmra.mxu0 %vm84_vm0, %v1440_v13  ;;  %v1450_v13 = vld [vmem:[%s1979_s0 + $0x14] sm:$0x7] }
 0x23d   :  { %906 = vmatpush.msra.mxu0 %v1667_v2 }
 0x244   :  { %1451 = vmatmul.msk.f32.vlgmr.msrb.gmra.mxu0 %vm84_vm0, %v1450_v13 }
 0x245   :  { %1007 = vmatpush.bf16.msrb.mxu0 %v1714_v17 }
 0x249   :  { %1008 = vmatpush.bf16.msrb.mxu0 %v1733_v21 }
 0x24c   :  { %1452 = vmatmul.msk.f32.vlgmr.msra.gmra.mxu0 %vm84_vm0, %v1450_v13 }
 0x24d   :  { %1113 = vmatpush.bf16.msra.mxu0 %v1707_v16 }
 0x251   :  { %1114 = vmatpush.bf16.msra.mxu0 %v1728_v20 }
 0x2a9   :  { %v626_v63 = vpop.f32.mrf.mxu0  ;;  %v639_v1 = vpop.f32.mrf.mxu1 }
 0x2aa   :  { %v643_v5 = vadd.f32 %v626_v63, %v571_v61  ;;  %v663_v6 = vadd.f32 %v639_v1, %v591_v62  ;;  %v729_v62 = vpop.f32.mrf.mxu3 }
 0x2ac   :  { %v1436_v7 = vmul.f32 -1.442695, %v643_v5  ;;  %v1437_v9 = vmul.f32 -1.442695, %v663_v6 }
 0x2ae   :  { %1523 = vpow2.f32 %v1436_v7 }
 0x2af   :  { %1525 = vpow2.f32 %v1437_v9 }
 0x2b0   :  { %v692_v10 = vpop.f32.mrf.mxu2 }
 0x2b1   :  { %v628_v11 = vpop.f32.mrf.mxu0  ;;  %v641_v12 = vpop.f32.mrf.mxu1  ;;  %v693_v40 = vadd.f32 %v1752_v35, %v692_v10 }
 0x2b2   :  { %v749_v63 = vpop.f32.mrf.mxu3 }
 0x2b3   :  { %v750_v6 = vadd.f32 %v1687_v4, %v749_v63 }
 0x2b4   :  { %v1524_v14 = vpop.eup %1523 }
 0x2b5   :  { %v1526_v18 = vpop.eup %1525  ;;  %v647_v22 = vadd.f32 1.0, %v1524_v14 }
 0x2b6   :  { %v667_v23 = vadd.f32 1.0, %v1526_v18 }
 0x2b7   :  { %1527 = vrcp.f32 %v647_v22  ;;  %v659_v31 = vand.u32 2147483648, %v647_v22  ;;  %v657_v33 = vand.u32 2147483647, %v647_v22  ;;  %vm653_vm13 = vweird.f32 %v647_v22 }
 0x2b8   :  { %1529 = vrcp.f32 %v667_v23  ;;  %v694_v24 = vpop.f32.mrf.mxu2  ;;  %v679_v47 = vand.u32 2147483648, %v667_v23  ;;  %vm673_vm2 = vweird.f32 %v667_v23  ;;  %v677_v48 = vand.u32 2147483647, %v667_v23 }
 0x2b9   :  { %v660_v38 = vor.u32 1.1754944e-38, %v659_v31  ;;  %vm658_vm15 = vcmp.eq.f32.partialorder %v657_v33, 8.507059e+37  ;;  %v769_v34 = vpop.f32.mrf.mxu0 }
 0x2ba   :  { %v680_v51 = vor.u32 1.1754944e-38, %v679_v47  ;;  %vm678_vm4 = vcmp.eq.f32.partialorder %v677_v48, 8.507059e+37 }
 0x2bd   :  { %v1528_v25 = vpop.eup %1527 }
 0x2be   :  { %v1530_v26 = vpop.eup %1529  ;;  %v649_v27 = vmul.f32 %v1528_v25, %v647_v22  ;;  %vm654_vm12 = vweird.f32 %v1528_v25 }
 0x2bf   :  { %v669_v29 = vmul.f32 %v1530_v26, %v667_v23  ;;  %vm655_vm14 = vmor %vm653_vm13, %vm654_vm12  ;;  %vm674_vm1 = vweird.f32 %v1530_v26 }
 0x2c0   :  { %v650_v28 = vsub.f32 1.0, %v649_v27  ;;  %vm675_vm3 = vmor %vm673_vm2, %vm674_vm1 }
 0x2c1   :  { %v670_v37 = vsub.f32 1.0, %v669_v29 }
 0x2c2   :  { %v651_v32 = vmul.f32 %v1528_v25, %v650_v28 }
 0x2c3   :  { %v671_v44 = vmul.f32 %v1530_v26, %v670_v37 }
 0x2c4   :  { %v652_v36 = vadd.f32 %v1528_v25, %v651_v32 }
 0x2c5   :  { %v672_v46 = vadd.f32 %v1530_v26, %v671_v44 }
 0x2c6   :  { %v656_v39 = vsel %vm655_vm14, %v1528_v25, %v652_v36 }
 0x2c7   :  { %v661_v42 = vsel %vm658_vm15, %v660_v38, %v656_v39  ;;  %v676_v49 = vsel %vm675_vm3, %v1530_v26, %v672_v46 }
 0x2c8   :  { %v696_v43 = vmul.f32 %v693_v40, %v661_v42  ;;  %v681_v54 = vsel %vm678_vm4, %v680_v51, %v676_v49  ;;  %v770_v40 = vadd.f32 %v1747_v30, %v769_v34 }
 0x2ca   :  { %v697_v45 = vadd.f32 %v696_v43, %v611_v41 }
 0x2cc   :  { %1531 = vtanh.f32 %v697_v45 }
 0x2d2   :  { %v1532_v50 = vpop.eup %1531 }
 0x2d3   :  { %v699_v52 = vsub.f32 %v1823_v53, %v1532_v50 }
 0x2d5   :  { %v700_v55 = vmul.f32 %v699_v52, %v681_v54 }
 0x2d7   :  { %v701_v57 = vadd.f32 %v1532_v50, %v700_v55 }
 0x2d9   :  { %v704_v59 = vsub.f32 %v701_v57, %v1823_v53 }
 0x2db   :  { %v705_v60 = vmul.f32 %v1439_v58, %v704_v59 }
 0x2dd   :  { %v1855_v56 = vadd.f32 %v705_v60, %v1823_v53  ;;  %v730_v53 = vadd.f32 %v1693_v8, %v729_v62  ;;  %v1449_v60 = vld [vmem:[%s1989_s1 + $0x10] sm:$0x7] }
 0x2df   :  { %v772_v61 = vpack.c.bf16 %v1855_v56, %v1855_v56 }
 0x2e1   :  { %1444 = vmatmul.msk.bf16.vlgmr.msra.gmra.mxu1 %vm271_vm9, %v772_v61  ;;  %1445 = vmatmul.msk.bf16.vlgmr.msra.gmra.mxu2 %vm271_vm9, %v772_v61 }
 0x2e2   :  { %1448 = vmatmul.msk.bf16.vlgmr.msrb.gmra.mxu3 %vm271_vm9, %v772_v61  ;;  %1045 = vmatpush.msra.mxu1 %v1659_v0 }
 0x2e3   :  { %1100 = vmatpush.bf16.msrb.mxu3 %v1702_v15  ;;  %1085 = vmatpush.msra.mxu2 %v1674_v3 }
 0x2e7   :  { %1101 = vmatpush.bf16.msrb.mxu3 %v1723_v19 }
 0x2f1   :  { %1453 = vmatmul.msk.f32.vlgmr.msrb.gmra.mxu1 %vm84_vm0, %v1450_v13 }
 0x2f2   :  { %1065 = vmatpush.msrb.mxu1 %v1667_v2 }
 0x35e   :  { %v785_v1 = vpop.f32.mrf.mxu1 }
 0x35f   :  { %v802_v5 = vadd.f32 %v785_v1, %v730_v53  ;;  %v888_v1 = vpop.f32.mrf.mxu0 }
 0x361   :  { %v1446_v7 = vmul.f32 -1.442695, %v802_v5 }
 0x363   :  { %1533 = vpow2.f32 %v1446_v7 }
 0x364   :  { %v798_v9 = vpop.f32.mrf.mxu2 }
 0x365   :  { %v822_v10 = vadd.f32 %v798_v9, %v750_v6  ;;  %v851_v11 = vpop.f32.mrf.mxu3  ;;  %v889_v6 = vadd.f32 %v1693_v8, %v888_v1 }
 0x366   :  { %v787_v12 = vpop.f32.mrf.mxu1  ;;  %v852_v43 = vadd.f32 %v1752_v35, %v851_v11 }
 0x367   :  { %v1447_v14 = vmul.f32 -1.442695, %v822_v10 }
 0x369   :  { %v1534_v18 = vpop.eup %1533  ;;  %1535 = vpow2.f32 %v1447_v14 }
 0x36a   :  { %v806_v22 = vadd.f32 1.0, %v1534_v18 }
 0x36c   :  { %1537 = vrcp.f32 %v806_v22  ;;  %v800_v23 = vpop.f32.mrf.mxu2  ;;  %v818_v31 = vand.u32 2147483648, %v806_v22  ;;  %v816_v33 = vand.u32 2147483647, %v806_v22  ;;  %vm812_vm6 = vweird.f32 %v806_v22 }
 0x36d   :  { %v853_v24 = vpop.f32.mrf.mxu3 }
 0x36e   :  { %v819_v39 = vor.u32 1.1754944e-38, %v818_v31  ;;  %vm817_vm8 = vcmp.eq.f32.partialorder %v816_v33, 8.507059e+37  ;;  %v928_v33 = vpop.f32.mrf.mxu1 }
 0x36f   :  { %v1536_v25 = vpop.eup %1535 }
 0x370   :  { %v826_v26 = vadd.f32 1.0, %v1536_v25 }
 0x372   :  { %v1538_v27 = vpop.eup %1537  ;;  %1539 = vrcp.f32 %v826_v26  ;;  %v838_v49 = vand.u32 2147483648, %v826_v26  ;;  %vm832_vm11 = vweird.f32 %v826_v26  ;;  %v836_v50 = vand.u32 2147483647, %v826_v26 }
 0x373   :  { %v808_v28 = vmul.f32 %v1538_v27, %v806_v22  ;;  %vm813_vm5 = vweird.f32 %v1538_v27 }
 0x374   :  { %vm814_vm7 = vmor %vm812_vm6, %vm813_vm5  ;;  %v839_v54 = vor.u32 1.1754944e-38, %v838_v49  ;;  %vm837_vm13 = vcmp.eq.f32.partialorder %v836_v50, 8.507059e+37 }
 0x375   :  { %v809_v29 = vsub.f32 1.0, %v808_v28 }
 0x377   :  { %v810_v32 = vmul.f32 %v1538_v27, %v809_v29 }
 0x378   :  { %v1540_v36 = vpop.eup %1539 }
 0x379   :  { %v828_v37 = vmul.f32 %v1540_v36, %v826_v26  ;;  %v811_v38 = vadd.f32 %v1538_v27, %v810_v32  ;;  %vm833_vm10 = vweird.f32 %v1540_v36 }
 0x37a   :  { %vm834_vm12 = vmor %vm832_vm11, %vm833_vm10 }
 0x37b   :  { %v829_v41 = vsub.f32 1.0, %v828_v37  ;;  %v815_v42 = vsel %vm814_vm7, %v1538_v27, %v811_v38 }
 0x37c   :  { %v820_v44 = vsel %vm817_vm8, %v819_v39, %v815_v42 }
 0x37d   :  { %v855_v45 = vmul.f32 %v852_v43, %v820_v44  ;;  %v830_v46 = vmul.f32 %v1540_v36, %v829_v41 }
 0x37f   :  { %v856_v47 = vadd.f32 %v855_v45, %v770_v40  ;;  %v831_v48 = vadd.f32 %v1540_v36, %v830_v46 }
 0x381   :  { %1541 = vtanh.f32 %v856_v47  ;;  %v835_v51 = vsel %vm834_vm12, %v1540_v36, %v831_v48 }
 0x382   :  { %v840_v57 = vsel %vm837_vm13, %v839_v54, %v835_v51  ;;  %v1459_v54 = vld [vmem:[%s1989_s1 + $0x14] sm:$0x7] }
 0x387   :  { %v1542_v52 = vpop.eup %1541 }
 0x388   :  { %v858_v55 = vsub.f32 %v1855_v56, %v1542_v52 }
 0x38a   :  { %v859_v58 = vmul.f32 %v858_v55, %v840_v57 }
 0x38c   :  { %v860_v59 = vadd.f32 %v1542_v52, %v859_v58 }
 0x38e   :  { %v863_v61 = vsub.f32 %v860_v59, %v1855_v56 }
 0x390   :  { %v864_v62 = vmul.f32 %v1449_v60, %v863_v61 }
 0x392   :  { %v1887_v53 = vadd.f32 %v864_v62, %v1855_v56  ;;  %v908_v56 = vpop.f32.mrf.mxu0 }
 0x393   :  { %v909_v7 = vadd.f32 %v1687_v4, %v908_v56 }
 0x394   :  { %v931_v63 = vpack.c.bf16 %v1887_v53, %v1887_v53 }
 0x396   :  { %1454 = vmatmul.msk.bf16.vlgmr.msrb.gmra.mxu2 %vm271_vm9, %v931_v63  ;;  %1455 = vmatmul.msk.bf16.vlgmr.msra.gmra.mxu3 %vm271_vm9, %v931_v63 }
 0x397   :  { %1458 = vmatmul.msk.bf16.vlgmr.msrb.gmra.mxu0 %vm271_vm9, %v931_v63  ;;  %1204 = vmatpush.msrb.mxu2 %v1659_v0 }
 0x398   :  { %1259 = vmatpush.bf16.msrb.mxu0 %v1702_v15  ;;  %1244 = vmatpush.msra.mxu3 %v1674_v3 }
 0x39c   :  { %1260 = vmatpush.bf16.msrb.mxu0 %v1723_v19  ;;  %v1460_v19 = vld [vmem:[%s1979_s0 + $0x18] sm:$0x7] }
 0x39d   :  { %1461 = vmatmul.msk.f32.vlgmr.msra.gmra.mxu1 %vm84_vm0, %v1460_v19 }
 0x39e   :  { %1166 = vmatpush.bf16.msra.mxu1 %v1714_v17 }
 0x3a2   :  { %1167 = vmatpush.bf16.msra.mxu1 %v1733_v21 }
 0x3a5   :  { %1462 = vmatmul.msk.f32.vlgmr.msrb.gmra.mxu1 %vm84_vm0, %v1460_v19 }
 0x3a6   :  { %1463 = vmatmul.msk.f32.vlgmr.msra.gmra.mxu2 %vm84_vm0, %v1460_v19  ;;  %1272 = vmatpush.bf16.msrb.mxu1 %v1707_v16  ;;  %v929_v16 = vadd.f32 %v1747_v30, %v928_v33 }
 0x3a7   :  { %1224 = vmatpush.msra.mxu2 %v1667_v2 }
 0x3aa   :  { %1273 = vmatpush.bf16.msrb.mxu1 %v1728_v20 }
 0x414   :  { %v1010_v5 = vpop.f32.mrf.mxu0 }
 0x415   :  { %v1011_v38 = vadd.f32 %v1752_v35, %v1010_v5 }
 0x419   :  { %v944_v9 = vpop.f32.mrf.mxu2  ;;  %v957_v10 = vpop.f32.mrf.mxu3 }
 0x41a   :  { %v961_v11 = vadd.f32 %v944_v9, %v889_v6  ;;  %v981_v12 = vadd.f32 %v957_v10, %v909_v7  ;;  %v1047_v60 = vpop.f32.mrf.mxu1 }
 0x41b   :  { %v1048_v5 = vadd.f32 %v1693_v8, %v1047_v60 }
 0x41c   :  { %v1456_v13 = vmul.f32 -1.442695, %v961_v11  ;;  %v1457_v14 = vmul.f32 -1.442695, %v981_v12  ;;  %v1012_v0 = vpop.f32.mrf.mxu0 }
 0x41e   :  { %1543 = vpow2.f32 %v1456_v13 }
 0x41f   :  { %1545 = vpow2.f32 %v1457_v14  ;;  %v1470_v14 = vld [vmem:[%s1979_s0 + $0x1c] sm:$0x7] }
 0x420   :  { %1471 = vmatmul.msk.f32.vlgmr.msrb.gmra.mxu2 %vm84_vm0, %v1470_v14 }
 0x421   :  { %v946_v15 = vpop.f32.mrf.mxu2  ;;  %v959_v3 = vpop.f32.mrf.mxu3  ;;  %1325 = vmatpush.bf16.msrb.mxu2 %v1714_v17 }
 0x422   :  { %v1067_v61 = vpop.f32.mrf.mxu1 }
 0x423   :  { %v1068_v62 = vadd.f32 %v1687_v4, %v1067_v61 }
 0x424   :  { %v1544_v18 = vpop.eup %1543 }
 0x425   :  { %v1546_v22 = vpop.eup %1545  ;;  %v965_v23 = vadd.f32 1.0, %v1544_v18  ;;  %1326 = vmatpush.bf16.msrb.mxu2 %v1733_v21 }
 0x426   :  { %v985_v24 = vadd.f32 1.0, %v1546_v22 }
 0x427   :  { %1547 = vrcp.f32 %v965_v23  ;;  %v977_v2 = vand.u32 2147483648, %v965_v23  ;;  %v975_v32 = vand.u32 2147483647, %v965_v23  ;;  %vm971_vm15 = vweird.f32 %v965_v23 }
 0x428   :  { %1549 = vrcp.f32 %v985_v24  ;;  %v997_v44 = vand.u32 2147483648, %v985_v24  ;;  %vm991_vm4 = vweird.f32 %v985_v24  ;;  %v995_v45 = vand.u32 2147483647, %v985_v24  ;;  %1472 = vmatmul.msk.f32.vlgmr.msra.gmra.mxu2 %vm84_vm0, %v1470_v14 }
 0x429   :  { %v978_v37 = vor.u32 1.1754944e-38, %v977_v2  ;;  %vm976_vm2 = vcmp.eq.f32.partialorder %v975_v32, 8.507059e+37 }
 0x42a   :  { %v998_v48 = vor.u32 1.1754944e-38, %v997_v44  ;;  %vm996_vm6 = vcmp.eq.f32.partialorder %v995_v45, 8.507059e+37 }
 0x42d   :  { %v1548_v25 = vpop.eup %1547 }
 0x42e   :  { %v1550_v26 = vpop.eup %1549  ;;  %v967_v27 = vmul.f32 %v1548_v25, %v965_v23  ;;  %vm972_vm14 = vweird.f32 %v1548_v25 }
 0x42f   :  { %v987_v29 = vmul.f32 %v1550_v26, %v985_v24  ;;  %vm973_vm1 = vmor %vm971_vm15, %vm972_vm14  ;;  %vm992_vm3 = vweird.f32 %v1550_v26 }
 0x430   :  { %v968_v28 = vsub.f32 1.0, %v967_v27  ;;  %vm993_vm5 = vmor %vm991_vm4, %vm992_vm3 }
 0x431   :  { %v988_v36 = vsub.f32 1.0, %v987_v29 }
 0x432   :  { %v969_v31 = vmul.f32 %v1548_v25, %v968_v28 }
 0x433   :  { %v989_v41 = vmul.f32 %v1550_v26, %v988_v36 }
 0x434   :  { %v970_v34 = vadd.f32 %v1548_v25, %v969_v31 }
 0x435   :  { %v990_v43 = vadd.f32 %v1550_v26, %v989_v41 }
 0x436   :  { %v974_v39 = vsel %vm973_vm1, %v1548_v25, %v970_v34 }
 0x437   :  { %v979_v40 = vsel %vm976_vm2, %v978_v37, %v974_v39  ;;  %v994_v46 = vsel %vm993_vm5, %v1550_v26, %v990_v43  ;;  %v1087_v26 = vpop.f32.mrf.mxu2 }
 0x438   :  { %v1014_v20 = vmul.f32 %v1011_v38, %v979_v40  ;;  %v999_v50 = vsel %vm996_vm6, %v998_v48, %v994_v46  ;;  %v1088_v29 = vadd.f32 %v1747_v30, %v1087_v26 }
 0x43a   :  { %v1015_v42 = vadd.f32 %v1014_v20, %v929_v16 }
 0x43c   :  { %1551 = vtanh.f32 %v1015_v42  ;;  %v1469_v42 = vld [vmem:[%s1989_s1 + $0x18] sm:$0x7] }
 0x442   :  { %v1552_v47 = vpop.eup %1551 }
 0x443   :  { %v1017_v49 = vsub.f32 %v1887_v53, %v1552_v47 }
 0x445   :  { %v1018_v51 = vmul.f32 %v1017_v49, %v999_v50  ;;  %v1577_v49 = vld [vmem:[%s1983_s5] ss:$0 sm:$0xff] }
 0x447   :  { %v1019_v52 = vadd.f32 %v1552_v47, %v1018_v51  ;;  %v1578_v51 = vld [vmem:[%s1982_s6] ss:$0 sm:$0xff] }
 0x449   :  { %v1022_v55 = vsub.f32 %v1019_v52, %v1887_v53 }
 0x44b   :  { %v1023_v57 = vmul.f32 %v1459_v54, %v1022_v55 }
 0x44d   :  { %v1919_v58 = vadd.f32 %v1023_v57, %v1887_v53 }
 0x44f   :  { %v1090_v59 = vpack.c.bf16 %v1919_v58, %v1919_v58 }
 0x451   :  { %1464 = vmatmul.msk.bf16.vlgmr.msrb.gmra.mxu3 %vm271_vm9, %v1090_v59  ;;  %1465 = vmatmul.msk.bf16.vlgmr.msra.gmra.mxu0 %vm271_vm9, %v1090_v59 }
 0x452   :  { %1468 = vmatmul.msk.bf16.vlgmr.msra.gmra.mxu1 %vm271_vm9, %v1090_v59 }
 0x461   :  { %1473 = vmatmul.msk.f32.vlgmr.msra.gmra.mxu3 %vm84_vm0, %v1470_v14 }
 0x4a3   :  { %v1206_v47 = vpop.f32.mrf.mxu2 }
 0x4a4   :  { %v1207_v50 = vadd.f32 %v1577_v49, %v1206_v47 }
 0x4ab   :  { %v1226_v48 = vpop.f32.mrf.mxu2 }
 0x4ac   :  { %v1227_v52 = vadd.f32 %v1578_v51, %v1226_v48 }
 0x4ce   :  { %v1116_v63 = vpop.f32.mrf.mxu0 }
 0x4cf   :  { %v1140_v1 = vadd.f32 %v1116_v63, %v1068_v62  ;;  %v1169_v56 = vpop.f32.mrf.mxu1 }
 0x4d0   :  { %v1170_v21 = vadd.f32 %v1752_v35, %v1169_v56 }
 0x4d1   :  { %v1467_v53 = vmul.f32 -1.442695, %v1140_v1 }
 0x4d3   :  { %1553 = vpow2.f32 %v1467_v53 }
 0x4d4   :  { %v1103_v6 = vpop.f32.mrf.mxu3 }
 0x4d5   :  { %v1120_v7 = vadd.f32 %v1103_v6, %v1048_v5 }
 0x4d6   :  { %v1118_v9 = vpop.f32.mrf.mxu0 }
 0x4d7   :  { %v1466_v10 = vmul.f32 -1.442695, %v1120_v7  ;;  %v1171_v11 = vpop.f32.mrf.mxu1 }
 0x4d9   :  { %1555 = vpow2.f32 %v1466_v10  ;;  %v1554_v12 = vpop.eup %1553 }
 0x4da   :  { %v1144_v8 = vadd.f32 1.0, %v1554_v12 }
 0x4dc   :  { %v1105_v13 = vpop.f32.mrf.mxu3  ;;  %v1156_v37 = vand.u32 2147483648, %v1144_v8  ;;  %vm1150_vm12 = vweird.f32 %v1144_v8  ;;  %v1154_v38 = vand.u32 2147483647, %v1144_v8 }
 0x4de   :  { %v1157_v40 = vor.u32 1.1754944e-38, %v1156_v37  ;;  %vm1155_vm14 = vcmp.eq.f32.partialorder %v1154_v38, 8.507059e+37 }
 0x4df   :  { %v1556_v4 = vpop.eup %1555 }
 0x4e0   :  { %v1124_v0 = vadd.f32 1.0, %v1556_v4 }
 0x4e2   :  { %1557 = vrcp.f32 %v1124_v0  ;;  %v1136_v23 = vand.u32 2147483648, %v1124_v0  ;;  %v1134_v25 = vand.u32 2147483647, %v1124_v0  ;;  %vm1130_vm8 = vweird.f32 %v1124_v0 }
 0x4e3   :  { %1559 = vrcp.f32 %v1144_v8 }
 0x4e4   :  { %v1137_v28 = vor.u32 1.1754944e-38, %v1136_v23  ;;  %vm1135_vm0 = vcmp.eq.f32.partialorder %v1134_v25, 8.507059e+37 }
 0x4e8   :  { %v1558_v15 = vpop.eup %1557 }
 0x4e9   :  { %v1560_v3 = vpop.eup %1559  ;;  %v1126_v19 = vmul.f32 %v1558_v15, %v1124_v0  ;;  %vm1131_vm7 = vweird.f32 %v1558_v15 }
 0x4ea   :  { %v1146_v22 = vmul.f32 %v1560_v3, %v1144_v8  ;;  %vm1132_vm10 = vmor %vm1130_vm8, %vm1131_vm7  ;;  %vm1151_vm11 = vweird.f32 %v1560_v3  ;;  %v1246_v8 = vpop.f32.mrf.mxu3  ;;  %vm1348_vm7 = vcmask 256000  }
 0x4eb   :  { %v1127_v18 = vsub.f32 1.0, %v1126_v19  ;;  %vm1152_vm13 = vmor %vm1150_vm12, %vm1151_vm11  ;;  %vm1375_vm11 = vcmask 2048  }
 0x4ec   :  { %v1147_v27 = vsub.f32 1.0, %v1146_v22  ;;  %v1579_v22 = vld [vmem:[%s1985_s11] ss:$0 sm:$0xff] }
 0x4ed   :  { %v1128_v24 = vmul.f32 %v1558_v15, %v1127_v18 }
 0x4ee   :  { %v1148_v33 = vmul.f32 %v1560_v3, %v1147_v27 }
 0x4ef   :  { %v1129_v17 = vadd.f32 %v1558_v15, %v1128_v24  ;;  %v1580_v24 = vld [vmem:[%s1984_s7] ss:$0 sm:$0xff] }
 0x4f0   :  { %v1149_v36 = vadd.f32 %v1560_v3, %v1148_v33  ;;  %v1247_v25 = vadd.f32 %v1580_v24, %v1246_v8 }
 0x4f1   :  { %v1133_v2 = vsel %vm1132_vm10, %v1558_v15, %v1129_v17  ;;  %v19_v15 = vstv %s1991_s13 }
 0x4f2   :  { %v1138_v31 = vsel %vm1135_vm0, %v1137_v28, %v1133_v2  ;;  %v1153_v16 = vsel %vm1152_vm13, %v1560_v3, %v1149_v36  ;;  %20 = vst [vmem:[#allocation2] sm:$0x1] %v19_v15 }
 0x4f3   :  { %v1173_v32 = vmul.f32 %v1170_v21, %v1138_v31  ;;  %v1158_v30 = vsel %vm1155_vm14, %v1157_v40, %v1153_v16  ;;  %v1479_v16 = vld [vmem:[%s1989_s1 + $0x1c] sm:$0x7] }
 0x4f5   :  { %v1174_v34 = vadd.f32 %v1173_v32, %v1088_v29 }
 0x4f7   :  { %1561 = vtanh.f32 %v1174_v34 }
 0x4fd   :  { %v1562_v39 = vpop.eup %1561 }
 0x4fe   :  { %v1176_v35 = vsub.f32 %v1919_v58, %v1562_v39 }
 0x500   :  { %v1177_v20 = vmul.f32 %v1176_v35, %v1158_v30  ;;  %v1491_v30 = vld [vmem:[%s1990_s12] ss:$0 sm:$0xff] }
 0x502   :  { %v1178_v41 = vadd.f32 %v1562_v39, %v1177_v20 }
 0x504   :  { %v1181_v43 = vsub.f32 %v1178_v41, %v1919_v58 }
 0x506   :  { %v1182_v44 = vmul.f32 %v1469_v42, %v1181_v43  ;;  %v1492_v43 = vld [vmem:[#allocation2] ss:$0 sm:$0xff] }
 0x508   :  { %v1944_v45 = vadd.f32 %v1182_v44, %v1919_v58 }
 0x50a   :  { %v1249_v46 = vpack.c.bf16 %v1944_v45, %v1944_v45 }
 0x50c   :  { %1474 = vmatmul.msk.bf16.vlgmr.msrb.gmra.mxu0 %vm271_vm9, %v1249_v46  ;;  %1475 = vmatmul.msk.bf16.vlgmr.msrb.gmra.mxu1 %vm271_vm9, %v1249_v46 }
 0x50d   :  { %1478 = vmatmul.msk.bf16.vlgmr.msrb.gmra.mxu2 %vm271_vm9, %v1249_v46 }
 0x589   :  { %v1262_v54 = vpop.f32.mrf.mxu0  ;;  %v1275_v55 = vpop.f32.mrf.mxu1 }
 0x58a   :  { %v1279_v57 = vadd.f32 %v1262_v54, %v1207_v50  ;;  %v1299_v58 = vadd.f32 %v1275_v55, %v1227_v52 }
 0x58c   :  { %v1476_v59 = vmul.f32 -1.442695, %v1279_v57  ;;  %v1477_v60 = vmul.f32 -1.442695, %v1299_v58 }
 0x58e   :  { %1563 = vpow2.f32 %v1476_v59 }
 0x58f   :  { %1565 = vpow2.f32 %v1477_v60 }
 0x590   :  { %v1328_v61 = vpop.f32.mrf.mxu2 }
 0x591   :  { %v1264_v62 = vpop.f32.mrf.mxu0  ;;  %v1277_v63 = vpop.f32.mrf.mxu1  ;;  %v1329_v23 = vadd.f32 %v1579_v22, %v1328_v61 }
 0x594   :  { %v1564_v1 = vpop.eup %1563 }
 0x595   :  { %v1566_v56 = vpop.eup %1565  ;;  %v1283_v5 = vadd.f32 1.0, %v1564_v1 }
 0x596   :  { %v1303_v53 = vadd.f32 1.0, %v1566_v56 }
 0x597   :  { %1567 = vrcp.f32 %v1283_v5  ;;  %v1295_v13 = vand.u32 2147483648, %v1283_v5  ;;  %v1293_v4 = vand.u32 2147483647, %v1283_v5  ;;  %vm1289_vm15 = vweird.f32 %v1283_v5 }
 0x598   :  { %1569 = vrcp.f32 %v1303_v53  ;;  %v1330_v6 = vpop.f32.mrf.mxu2  ;;  %v1315_v29 = vand.u32 2147483648, %v1303_v53  ;;  %vm1309_vm4 = vweird.f32 %v1303_v53  ;;  %v1313_v2 = vand.u32 2147483647, %v1303_v53 }
 0x599   :  { %v1296_v19 = vor.u32 1.1754944e-38, %v1295_v13  ;;  %vm1294_vm2 = vcmp.eq.f32.partialorder %v1293_v4, 8.507059e+37 }
 0x59a   :  { %v1316_v33 = vor.u32 1.1754944e-38, %v1315_v29  ;;  %vm1314_vm6 = vcmp.eq.f32.partialorder %v1313_v2, 8.507059e+37 }
 0x59d   :  { %v1568_v7 = vpop.eup %1567 }
 0x59e   :  { %v1570_v9 = vpop.eup %1569  ;;  %v1285_v10 = vmul.f32 %v1568_v7, %v1283_v5  ;;  %vm1290_vm9 = vweird.f32 %v1568_v7 }
 0x59f   :  { %v1305_v12 = vmul.f32 %v1570_v9, %v1303_v53  ;;  %vm1291_vm1 = vmor %vm1289_vm15, %vm1290_vm9  ;;  %vm1310_vm3 = vweird.f32 %v1570_v9 }
 0x5a0   :  { %v1286_v11 = vsub.f32 1.0, %v1285_v10  ;;  %vm1311_vm5 = vmor %vm1309_vm4, %vm1310_vm3 }
 0x5a1   :  { %v1306_v3 = vsub.f32 1.0, %v1305_v12 }
 0x5a2   :  { %v1287_v14 = vmul.f32 %v1568_v7, %v1286_v11 }
 0x5a3   :  { %v1307_v27 = vmul.f32 %v1570_v9, %v1306_v3 }
 0x5a4   :  { %v1288_v0 = vadd.f32 %v1568_v7, %v1287_v14 }
 0x5a5   :  { %v1308_v21 = vadd.f32 %v1570_v9, %v1307_v27 }
 0x5a6   :  { %v1292_v18 = vsel %vm1291_vm1, %v1568_v7, %v1288_v0 }
 0x5a7   :  { %v1297_v26 = vsel %vm1294_vm2, %v1296_v19, %v1292_v18  ;;  %v1312_v31 = vsel %vm1311_vm5, %v1570_v9, %v1308_v21 }
 0x5a8   :  { %v1332_v17 = vmul.f32 %v1329_v23, %v1297_v26  ;;  %v1317_v36 = vsel %vm1314_vm6, %v1316_v33, %v1312_v31 }
 0x5aa   :  { %v1333_v28 = vadd.f32 %v1332_v17, %v1247_v25 }
 0x5ac   :  { %1571 = vtanh.f32 %v1333_v28 }
 0x5b2   :  { %v1572_v32 = vpop.eup %1571 }
 0x5b3   :  { %v1335_v34 = vsub.f32 %v1944_v45, %v1572_v32 }
 0x5b5   :  { %v1336_v37 = vmul.f32 %v1335_v34, %v1317_v36 }
 0x5b7   :  { %v1337_v38 = vadd.f32 %v1572_v32, %v1336_v37 }
 0x5b9   :  { %v1340_v39 = vsub.f32 %v1337_v38, %v1944_v45 }
 0x5bb   :  { %v1341_v40 = vmul.f32 %v1479_v16, %v1340_v39 }
 0x5bd   :  { %v1342_v35 = vadd.f32 %v1341_v40, %v1944_v45 }
 0x5bf   :  { %v1343_v20 = vmul.f32 %v1479_v16, %v1342_v35 }
 0x5c1   :  { %v1347_v41 = vmul.f32 %v1491_v30, %v1343_v20 }
 0x5c3   :  { %v1349_v42 = vsel %vm1348_vm7, %v1347_v41, 0.0 }
 0x5c4   :  { %1350 = vadd.xlane.f32.xlu0 %v1349_v42 }
 0x637   :  { %v1351_v44 = vpop.xlane.xlu0 %1350 }
 0x638   :  { %v1355_v46 = vadd.f32 %v1492_v43, %v1351_v44 }
 0x63a   :  { %v1480_v47 = vmul.f32 -1.442695, %v1355_v46 }
 0x63c   :  { %1573 = vpow2.f32 %v1480_v47 }
 0x642   :  { %v1574_v48 = vpop.eup %1573 }
 0x643   :  { %v1359_v49 = vadd.f32 1.0, %v1574_v48 }
 0x645   :  { %1575 = vrcp.f32 %v1359_v49  ;;  %v1371_v52 = vand.u32 2147483648, %v1359_v49  ;;  %v1369_v55 = vand.u32 2147483647, %v1359_v49  ;;  %vm1365_vm10 = vweird.f32 %v1359_v49 }
 0x647   :  { %v1372_v58 = vor.u32 1.1754944e-38, %v1371_v52  ;;  %vm1370_vm12 = vcmp.eq.f32.partialorder %v1369_v55, 8.507059e+37 }
 0x64b   :  { %v1576_v50 = vpop.eup %1575 }
 0x64c   :  { %v1361_v51 = vmul.f32 %v1576_v50, %v1359_v49  ;;  %vm1366_vm8 = vweird.f32 %v1576_v50 }
 0x64d   :  { %vm1367_vm0 = vmor %vm1365_vm10, %vm1366_vm8 }
 0x64e   :  { %v1362_v45 = vsub.f32 1.0, %v1361_v51 }
 0x650   :  { %v1363_v54 = vmul.f32 %v1576_v50, %v1362_v45 }
 0x652   :  { %v1364_v57 = vadd.f32 %v1576_v50, %v1363_v54 }
 0x654   :  { %v1368_v59 = vsel %vm1367_vm0, %v1576_v50, %v1364_v57 }
 0x655   :  { %v1373_v60 = vsel %vm1370_vm12, %v1372_v58, %v1368_v59 }
 0x656   :  { %1376 = vst.msk [vmem:[%s1992_s14] sm:$0x7] %vm1375_vm11, %v1373_v60 }

</bundles_post_ra>
